<compile_context>
chip_gen: v7x
topology: tpu7x:2x2x1
jax: 0.10.0
libtpu: 0.0.40
codegen_flags: <defaults>
</compile_context>

<pallas_src>
import math
import functools

import numpy as np
import jax
import jax.numpy as jnp
from jax.experimental import pallas as pl
from jax.experimental.pallas import tpu as pltpu

_BF16 = jnp.bfloat16
_TM_LINEAR = 512   # row tile for generic linear kernels (v7x-safe with resident weights)
_TM_FFN = 256      # row tile for the fused FFN (d_ff intermediate held live)


def _mxu_dot(a, b):
    """bf16 MXU matmul with f32 accumulation."""
    return jnp.dot(a.astype(_BF16), b.astype(_BF16), preferred_element_type=jnp.float32)


def _row_tile(M, tm):
    if M <= tm:
        return M
    return max(8, (tm // 8) * 8)


# ----------------------------------------------------------------------------------
# Row-tiled linear: y = x @ w (+ b) (+ residual).  Grid over M, weight resident.
# ----------------------------------------------------------------------------------
def _make_linear_kernel(has_bias, has_res):
    def kernel(*refs):
        x_ref, w_ref = refs[0], refs[1]
        idx = 2
        acc = _mxu_dot(x_ref[...], w_ref[...])
        if has_bias:
            acc = acc + refs[idx][...].astype(jnp.float32)
            idx += 1
        if has_res:
            acc = acc + refs[idx][...].astype(jnp.float32)
            idx += 1
        o_ref = refs[idx]
        o_ref[...] = acc.astype(o_ref.dtype)
    return kernel


def pallas_linear(x, w, b=None, residual=None, out_dtype=_BF16, tm=_TM_LINEAR):
    shape = x.shape
    K, N = shape[-1], w.shape[1]
    x2 = x.reshape(-1, K)
    M = x2.shape[0]
    tm = _row_tile(M, tm)
    grid = (pl.cdiv(M, tm),)

    in_specs = [pl.BlockSpec((tm, K), lambda i: (i, 0)),
                pl.BlockSpec((K, N), lambda i: (0, 0))]
    args = [x2, w]
    if b is not None:
        in_specs.append(pl.BlockSpec((1, N), lambda i: (0, 0)))
        args.append(b.reshape(1, N))
    if residual is not None:
        in_specs.append(pl.BlockSpec((tm, N), lambda i: (i, 0)))
        args.append(residual.reshape(-1, N))

    out = pl.pallas_call(
        _make_linear_kernel(b is not None, residual is not None),
        grid=grid,
        in_specs=in_specs,
        out_specs=pl.BlockSpec((tm, N), lambda i: (i, 0)),
        out_shape=jax.ShapeDtypeStruct((M, N), out_dtype),
        compiler_params=pltpu.CompilerParams(dimension_semantics=("parallel",)),
    )(*args)
    return out.reshape(shape[:-1] + (N,))


# ----------------------------------------------------------------------------------
# Fused FFN: conv1(1x1) + activation + conv2(1x1) + residual (Conv1d layers have no bias).
# Grid over rows, both weights resident.
# ----------------------------------------------------------------------------------
def _make_ffn_kernel(activation):
    def kernel(x_ref, w1_ref, w2_ref, o_ref):
        x = x_ref[...]
        h = _mxu_dot(x, w1_ref[...])
        if activation == "relu":
            h = jnp.maximum(h, 0.0)
        else:
            h = jax.nn.gelu(h)
        y = _mxu_dot(h, w2_ref[...])
        o_ref[...] = (x.astype(jnp.float32) + y).astype(o_ref.dtype)
    return kernel


def pallas_ffn_residual(x, w1, w2, activation, tm=_TM_FFN):
    shape = x.shape
    D, F = w1.shape
    x2 = x.reshape(-1, D)
    M = x2.shape[0]
    tm = _row_tile(M, tm)
    out = pl.pallas_call(
        _make_ffn_kernel(activation),
        grid=(pl.cdiv(M, tm),),
        in_specs=[pl.BlockSpec((tm, D), lambda i: (i, 0)),
                  pl.BlockSpec((D, F), lambda i: (0, 0)),
                  pl.BlockSpec((F, D), lambda i: (0, 0))],
        out_specs=pl.BlockSpec((tm, D), lambda i: (i, 0)),
        out_shape=jax.ShapeDtypeStruct((M, D), _BF16),
        compiler_params=pltpu.CompilerParams(dimension_semantics=("parallel",)),
    )(x2, w1, w2)
    return out.reshape(shape)


# ----------------------------------------------------------------------------------
# series_decomp: moving average (AvgPool1d, replicate padding) expressed as an (L, L)
# averaging-matrix matmul (bf16 MXU), with the preceding residual add folded in.
# Grid over batch.
# ----------------------------------------------------------------------------------
@functools.lru_cache(maxsize=None)
def _avg_matrix_np(L, ksize):
    pad = (ksize - 1) // 2
    A = np.zeros((L, L), np.float32)
    for t in range(L):
        for j in range(-pad, pad + 1):
            A[t, min(max(t + j, 0), L - 1)] += 1.0 / ksize
    return A


def _make_decomp_kernel(with_add, with_trend):
    def kernel(*refs):
        idx = 0
        x = refs[idx][0].astype(jnp.float32)            # (L, C)
        idx += 1
        if with_add:
            x = x + refs[idx][0].astype(jnp.float32)    # folded residual add
            idx += 1
        a_ref = refs[idx]                                # (L, L) averaging matrix (bf16)
        idx += 1
        trend = _mxu_dot(a_ref[...], x)
        seas_ref = refs[idx]
        idx += 1
        seas_ref[0] = (x - trend).astype(seas_ref.dtype)
        if with_trend:
            refs[idx][0] = trend.astype(refs[idx].dtype)
    return kernel


def series_decomp(x, ksize, residual=None, need_trend=True):
    """Returns (seasonal, trend) like PyTorch series_decomp, optionally on x + residual."""
    B, L, C = x.shape
    A = jnp.asarray(_avg_matrix_np(L, ksize)).astype(_BF16)
    with_add = residual is not None

    in_specs = [pl.BlockSpec((1, L, C), lambda b: (b, 0, 0))]
    args = [x]
    if with_add:
        in_specs.append(pl.BlockSpec((1, L, C), lambda b: (b, 0, 0)))
        args.append(residual)
    in_specs.append(pl.BlockSpec((L, L), lambda b: (0, 0)))
    args.append(A)

    blk = pl.BlockSpec((1, L, C), lambda b: (b, 0, 0))
    if need_trend:
        out_shape = (jax.ShapeDtypeStruct((B, L, C), _BF16),
                     jax.ShapeDtypeStruct((B, L, C), _BF16))
        out_specs = (blk, pl.BlockSpec((1, L, C), lambda b: (b, 0, 0)))
    else:
        out_shape = jax.ShapeDtypeStruct((B, L, C), _BF16)
        out_specs = blk

    out = pl.pallas_call(
        _make_decomp_kernel(with_add, need_trend),
        grid=(B,),
        in_specs=in_specs,
        out_specs=out_specs,
        out_shape=out_shape,
        compiler_params=pltpu.CompilerParams(dimension_semantics=("parallel",)),
    )(*args)
    if need_trend:
        seas, trend = out
        return seas, trend
    return out, None


# ----------------------------------------------------------------------------------
# my_Layernorm: LayerNorm + subtract per-series time mean.  Grid over batch.
# ----------------------------------------------------------------------------------
def _my_layernorm_kernel(x_ref, g_ref, b_ref, o_ref):
    x = x_ref[0].astype(jnp.float32)                     # (L, D)
    mu = jnp.mean(x, axis=-1, keepdims=True)
    var = jnp.mean(jnp.square(x - mu), axis=-1, keepdims=True)
    xhat = (x - mu) * jax.lax.rsqrt(var + 1e-5)
    xhat = xhat * g_ref[...].astype(jnp.float32) + b_ref[...].astype(jnp.float32)
    seq_mean = jnp.mean(xhat, axis=0, keepdims=True)
    o_ref[0] = (xhat - seq_mean).astype(o_ref.dtype)


def my_layernorm(x, gamma, beta):
    B, L, D = x.shape
    return pl.pallas_call(
        _my_layernorm_kernel,
        grid=(B,),
        in_specs=[pl.BlockSpec((1, L, D), lambda b: (b, 0, 0)),
                  pl.BlockSpec((1, D), lambda b: (0, 0)),
                  pl.BlockSpec((1, D), lambda b: (0, 0))],
        out_specs=pl.BlockSpec((1, L, D), lambda b: (b, 0, 0)),
        out_shape=jax.ShapeDtypeStruct((B, L, D), _BF16),
        compiler_params=pltpu.CompilerParams(dimension_semantics=("parallel",)),
    )(x, gamma.reshape(1, D), beta.reshape(1, D))


# ----------------------------------------------------------------------------------
# AutoCorrelation time-delay aggregation fused with the attention output projection.
# delay/weights live in SMEM; V is loaded once (L, D), doubled inside VMEM scratch and
# circularly gathered with a dynamic sublane slice; accumulation in f32 VMEM scratch.
# ----------------------------------------------------------------------------------
def _agg_proj_kernel(delay_ref, w_ref, v_ref, wo_ref, bo_ref, o_ref,
                     v2_scr, acc_scr, *, top_k, L):
    b = pl.program_id(0)
    v = v_ref[0].astype(jnp.float32)                     # (L, D)
    v2_scr[pl.ds(0, L), :] = v
    v2_scr[pl.ds(L, L), :] = v
    acc_scr[...] = jnp.zeros_like(acc_scr)
    for i in range(top_k):                               # static, small (factor * log L)
        d = delay_ref[b, i]                              # in [0, L): pl.ds(d, L) stays in 2L
        wi = w_ref[b, i]
        blk = v2_scr[pl.ds(d, L), :]                     # (L, D) circular gather
        acc_scr[...] += wi * blk
    out = _mxu_dot(acc_scr[...], wo_ref[...]) + bo_ref[...]
    o_ref[0] = out.astype(o_ref.dtype)


def time_delay_agg_proj(v, delay, weights, wo, bo, L, top_k):
    B, _, D = v.shape
    N = wo.shape[1]
    return pl.pallas_call(
        functools.partial(_agg_proj_kernel, top_k=top_k, L=L),
        grid=(B,),
        out_shape=jax.ShapeDtypeStruct((B, L, N), _BF16),
        in_specs=[pl.BlockSpec(memory_space=pltpu.MemorySpace.SMEM),
                  pl.BlockSpec(memory_space=pltpu.MemorySpace.SMEM),
                  pl.BlockSpec((1, L, D), lambda b: (b, 0, 0)),
                  pl.BlockSpec((D, N), lambda b: (0, 0)),
                  pl.BlockSpec((1, N), lambda b: (0, 0))],
        out_specs=pl.BlockSpec((1, L, N), lambda b: (b, 0, 0)),
        scratch_shapes=[pltpu.VMEM((2 * L, D), jnp.float32),
                        pltpu.VMEM((L, D), jnp.float32)],
        compiler_params=pltpu.CompilerParams(dimension_semantics=("parallel",)),
    )(delay, weights, v, wo, bo.reshape(1, N).astype(jnp.float32))


# ----------------------------------------------------------------------------------
# kernel-3 circular Conv1d (token embedding, trend projection): the three circular taps
# are stacked on the lane axis in XLA glue and the whole conv becomes a single row-tiled
# matmul with K = 3*Cin (no unaligned sublane slices, reuses pallas_linear tiling).
# Weight layout is (tap, Cin, Cout) with taps [t-1, t, t+1].
# ----------------------------------------------------------------------------------
def circular_conv3(x, w3, out_dtype=_BF16):
    B, L, Cin = x.shape
    Cout = w3.shape[2]
    x3 = jnp.concatenate([jnp.roll(x, 1, axis=1), x, jnp.roll(x, -1, axis=1)], axis=-1)
    return pallas_linear(x3, w3.reshape(3 * Cin, Cout), out_dtype=out_dtype)


# ----------------------------------------------------------------------------------
# Model components
# ----------------------------------------------------------------------------------
def _autocorr_core(p, q, k, v, n_heads, factor):
    B, L, dm = q.shape
    S = k.shape[1]
    E = dm // n_heads
    if L > S:
        zpad = jnp.zeros((B, L - S, dm), k.dtype)
        k = jnp.concatenate([k, zpad], axis=1)
        v = jnp.concatenate([v, zpad], axis=1)
    else:
        k = k[:, :L]
        v = v[:, :L]

    # period-based dependencies via FFT correlation
    # TODO(synk): FFT has no Pallas TPU primitive; computed with jnp.fft (XLA) as glue.
    qh = jnp.transpose(q.reshape(B, L, n_heads, E), (0, 2, 3, 1)).astype(jnp.float32)
    kh = jnp.transpose(k.reshape(B, L, n_heads, E), (0, 2, 3, 1)).astype(jnp.float32)
    corr = jnp.fft.irfft(jnp.fft.rfft(qh, axis=-1) * jnp.conj(jnp.fft.rfft(kh, axis=-1)),
                         n=L, axis=-1)                   # (B, H, E, L)

    # inference-mode time-delay aggregation (top-k delays shared across heads/channels)
    mean_value = jnp.mean(corr, axis=(1, 2))             # (B, L)
    top_k = max(1, int(factor * math.log(L)))
    weights, delay = jax.lax.top_k(mean_value, top_k)    # (B, top_k)
    tmp_corr = jax.nn.softmax(weights, axis=-1).astype(jnp.float32)
    delay = delay.astype(jnp.int32)
    return time_delay_agg_proj(v, delay, tmp_corr, p["wo"], p["bo"], L, top_k)


def self_autocorrelation(p, x, n_heads, factor):
    dm = p["wo"].shape[0]
    qkv = pallas_linear(x, p["w_qkv"], p["b_qkv"])        # fused QKV projection
    q, k, v = qkv[..., :dm], qkv[..., dm:2 * dm], qkv[..., 2 * dm:]
    return _autocorr_core(p, q, k, v, n_heads, factor)


def cross_autocorrelation(p, x, cross, n_heads, factor):
    dm = p["wo"].shape[0]
    q = pallas_linear(x, p["wq"], p["bq"])
    kv = pallas_linear(cross, p["w_kv"], p["b_kv"])       # fused KV projection
    k, v = kv[..., :dm], kv[..., dm:]
    return _autocorr_core(p, q, k, v, n_heads, factor)


def encoder_layer(p, x, n_heads, factor, ksize, activation):
    new_x = self_autocorrelation(p["attn"], x, n_heads, factor)
    x, _ = series_decomp(x, ksize, residual=new_x, need_trend=False)    # decomp(x + new_x)
    y = pallas_ffn_residual(x, p["conv1_w"], p["conv2_w"], activation)  # x + conv2(act(conv1(x)))
    res, _ = series_decomp(y, ksize, need_trend=False)
    return res


def decoder_layer(p, x, cross, n_heads, factor, ksize, activation):
    sa = self_autocorrelation(p["self_attn"], x, n_heads, factor)
    x, trend1 = series_decomp(x, ksize, residual=sa)
    ca = cross_autocorrelation(p["cross_attn"], x, cross, n_heads, factor)
    x, trend2 = series_decomp(x, ksize, residual=ca)
    y = pallas_ffn_residual(x, p["conv1_w"], p["conv2_w"], activation)
    x, trend3 = series_decomp(y, ksize)
    trend_sum = trend1 + trend2 + trend3
    residual_trend = circular_conv3(trend_sum, p["trend_proj_w"], out_dtype=jnp.float32)
    return x, residual_trend


def model_forward(params, x_raw, cfg):
    # x_raw: (B, 1, enc_in, seq_len)  ->  x_enc: (B, seq_len, enc_in)
    x_enc = jnp.transpose(x_raw[:, 0, :, :], (0, 2, 1)).astype(jnp.float32)
    B, _, enc_in = x_enc.shape
    label_len, pred_len = cfg["label_len"], cfg["pred_len"]
    ksize, n_heads, factor = cfg["moving_avg"], cfg["n_heads"], cfg["factor"]
    act = cfg["activation"]

    # decomposition init (forecast path); trend path kept in f32
    mean = jnp.broadcast_to(jnp.mean(x_enc, axis=1, keepdims=True), (B, pred_len, enc_in))
    zeros = jnp.zeros((B, pred_len, enc_in), _BF16)
    x_enc_bf = x_enc.astype(_BF16)
    seasonal_init, trend_init = series_decomp(x_enc_bf, ksize)
    trend_init = jnp.concatenate(
        [trend_init[:, -label_len:, :].astype(jnp.float32), mean], axis=1)
    seasonal_init = jnp.concatenate([seasonal_init[:, -label_len:, :], zeros], axis=1)

    # encoder (DataEmbedding_wo_pos with x_mark=None -> token conv embedding only)
    enc_out = circular_conv3(x_enc_bf, params["enc_emb_w"])
    for lp in params["enc_layers"]:
        enc_out = encoder_layer(lp, enc_out, n_heads, factor, ksize, act)
    enc_out = my_layernorm(enc_out, params["enc_norm_g"], params["enc_norm_b"])

    # decoder
    x = circular_conv3(seasonal_init, params["dec_emb_w"])
    trend = trend_init
    for lp in params["dec_layers"]:
        x, residual_trend = decoder_layer(lp, x, enc_out, n_heads, factor, ksize, act)
        trend = trend + residual_trend
    x = my_layernorm(x, params["dec_norm_g"], params["dec_norm_b"])
    # final projection with the trend residual fused into the matmul kernel
    dec_out = pallas_linear(x, params["proj_w"], params["proj_b"],
                            residual=trend, out_dtype=jnp.float32)

    # PyTorch forward returns dec_out[:, -pred_len:, :3] (first 3 channels) — kept verbatim.
    return dec_out[:, -pred_len:, :3]


# ----------------------------------------------------------------------------------
# Deterministic parameter init (synthetic; shapes follow the PyTorch module).
# Weights stored in bf16 once; biases / norm affine params stay f32.
# ----------------------------------------------------------------------------------
def init_params(key, cfg):
    dm, dff = cfg["d_model"], cfg["d_ff"]
    ci, di, co = cfg["enc_in"], cfg["dec_in"], cfg["c_out"]
    keys = iter(jax.random.split(key, 128))

    def nrm(shape, scale=0.1, dtype=_BF16):
        return (scale * jax.random.normal(next(keys), shape)).astype(dtype)

    def attn_self():
        wq, wk, wv = nrm((dm, dm)), nrm((dm, dm)), nrm((dm, dm))
        bq, bk, bv = nrm((dm,), dtype=jnp.float32), nrm((dm,), dtype=jnp.float32), nrm((dm,), dtype=jnp.float32)
        return dict(w_qkv=jnp.concatenate([wq, wk, wv], axis=1),
                    b_qkv=jnp.concatenate([bq, bk, bv], axis=0),
                    wo=nrm((dm, dm)), bo=nrm((dm,), dtype=jnp.float32))

    def attn_cross():
        wk, wv = nrm((dm, dm)), nrm((dm, dm))
        bk, bv = nrm((dm,), dtype=jnp.float32), nrm((dm,), dtype=jnp.float32)
        return dict(wq=nrm((dm, dm)), bq=nrm((dm,), dtype=jnp.float32),
                    w_kv=jnp.concatenate([wk, wv], axis=1),
                    b_kv=jnp.concatenate([bk, bv], axis=0),
                    wo=nrm((dm, dm)), bo=nrm((dm,), dtype=jnp.float32))

    params = dict(
        enc_emb_w=nrm((3, ci, dm)),
        dec_emb_w=nrm((3, di, dm)),
        enc_layers=[dict(attn=attn_self(),
                         conv1_w=nrm((dm, dff)),
                         conv2_w=nrm((dff, dm)))
                    for _ in range(cfg["e_layers"])],
        enc_norm_g=jnp.ones((dm,), jnp.float32),
        enc_norm_b=jnp.zeros((dm,), jnp.float32),
        dec_layers=[dict(self_attn=attn_self(),
                         cross_attn=attn_cross(),
                         conv1_w=nrm((dm, dff)),
                         conv2_w=nrm((dff, dm)),
                         trend_proj_w=nrm((3, dm, co)))
                    for _ in range(cfg["d_layers"])],
        dec_norm_g=jnp.ones((dm,), jnp.float32),
        dec_norm_b=jnp.zeros((dm,), jnp.float32),
        proj_w=nrm((dm, co)),
        proj_b=nrm((co,), dtype=jnp.float32),
    )
    return params


if __name__ == "__main__":
    cfg = dict(seq_len=16, label_len=8, pred_len=8,
               enc_in=4, dec_in=4, c_out=4,
               d_model=32, n_heads=4, d_ff=64,
               e_layers=1, d_layers=1,
               moving_avg=5, factor=1, activation="relu")

    key = jax.random.PRNGKey(0)
    params = init_params(key, cfg)

    # raw input matching the PyTorch forward: (B, 1, enc_in, seq_len)
    x = jax.random.normal(jax.random.PRNGKey(0),
                          (2, 1, cfg["enc_in"], cfg["seq_len"]), jnp.float32)

    fwd = jax.jit(lambda p, xx: model_forward(p, xx, cfg))
    out = fwd(params, x)
    out = jax.block_until_ready(out)
    assert out.shape == (2, cfg["pred_len"], 3), out.shape
    assert bool(jnp.all(jnp.isfinite(out)))
    print("KERNEL_OK")
</pallas_src>

<mosaic_0001>
module attributes {stable_mosaic.version = 11 : i64} {
  func.func @kernel(%arg0: i32, %arg1: memref<1x16x4xbf16, #tpu.memory_space<vmem>>, %arg2: memref<16x16xbf16, #tpu.memory_space<vmem>>, %arg3: memref<1x16x4xbf16, #tpu.memory_space<vmem>>, %arg4: memref<1x16x4xbf16, #tpu.memory_space<vmem>>) attributes {dimension_semantics = [#tpu.dimension_semantics<parallel>], iteration_bounds = array<i64: 2>, scalar_prefetch = 0 : i64, scratch_operands = 0 : i64, tpu.core_type = #tpu.core_type<tc>, window_params = [{transform_indices = @transform_0, window_bounds = array<i64: 1, 16, 4>}, {pipeline_mode = #tpu.pipeline_mode<synchronous>, transform_indices = @transform_1, window_bounds = array<i64: 16, 16>}, {transform_indices = @transform_2, window_bounds = array<i64: 1, 16, 4>}, {transform_indices = @transform_3, window_bounds = array<i64: 1, 16, 4>}]} {
    %c0 = arith.constant 0 : index
    %c0_0 = arith.constant 0 : index
    %c0_1 = arith.constant 0 : index
    %0 = vector.load %arg1[%c0, %c0_0, %c0_1] : memref<1x16x4xbf16, #tpu.memory_space<vmem>>, vector<1x16x4xbf16>
    %1 = vector.shape_cast %0 : vector<1x16x4xbf16> to vector<16x4xbf16>
    %2 = arith.extf %1 : vector<16x4xbf16> to vector<16x4xf32>
    %c0_2 = arith.constant 0 : index
    %c0_3 = arith.constant 0 : index
    %3 = vector.load %arg2[%c0_2, %c0_3] : memref<16x16xbf16, #tpu.memory_space<vmem>>, vector<16x16xbf16>
    %4 = arith.truncf %2 : vector<16x4xf32> to vector<16x4xbf16>
    %cst = arith.constant dense<0.000000e+00> : vector<16x4xf32>
    %5 = tpu.matmul %3, %4, %cst {dimension_numbers = #tpu.dot_dimension_numbers<[1], [0], [0], [1], [0, 0, 1, 1], [], []>} : vector<16x16xbf16>, vector<16x4xbf16>, vector<16x4xf32> -> vector<16x4xf32>
    %6 = arith.subf %2, %5 : vector<16x4xf32>
    %7 = arith.truncf %6 : vector<16x4xf32> to vector<16x4xbf16>
    %c0_4 = arith.constant 0 : index
    %c0_5 = arith.constant 0 : index
    %c0_6 = arith.constant 0 : index
    %8 = vector.load %arg3[%c0_4, %c0_5, %c0_6] : memref<1x16x4xbf16, #tpu.memory_space<vmem>>, vector<1x16x4xbf16>
    %9 = vector.shape_cast %8 : vector<1x16x4xbf16> to vector<16x4xbf16>
    %10 = vector.shape_cast %7 : vector<16x4xbf16> to vector<1x16x4xbf16>
    tpu.vector_store %arg3[%c0_4, %c0_5, %c0_6], %10 {strides = array<i32>} : memref<1x16x4xbf16, #tpu.memory_space<vmem>>, vector<1x16x4xbf16>,
    %11 = arith.truncf %5 : vector<16x4xf32> to vector<16x4xbf16>
    %c0_7 = arith.constant 0 : index
    %c0_8 = arith.constant 0 : index
    %c0_9 = arith.constant 0 : index
    %12 = vector.load %arg4[%c0_7, %c0_8, %c0_9] : memref<1x16x4xbf16, #tpu.memory_space<vmem>>, vector<1x16x4xbf16>
    %13 = vector.shape_cast %12 : vector<1x16x4xbf16> to vector<16x4xbf16>
    %14 = vector.shape_cast %11 : vector<16x4xbf16> to vector<1x16x4xbf16>
    tpu.vector_store %arg4[%c0_7, %c0_8, %c0_9], %14 {strides = array<i32>} : memref<1x16x4xbf16, #tpu.memory_space<vmem>>, vector<1x16x4xbf16>,
    return
  }
  func.func @transform_0(%arg0: i32) -> (i32, i32, i32) {
    %c0_i32 = arith.constant 0 : i32
    %c0_i32_0 = arith.constant 0 : i32
    %c0_i32_1 = arith.constant 0 : i32
    return %arg0, %c0_i32, %c0_i32_0 : i32, i32, i32
  }
  func.func @transform_1(%arg0: i32) -> (i32, i32) {
    %c0_i32 = arith.constant 0 : i32
    %c0_i32_0 = arith.constant 0 : i32
    %c0_i32_1 = arith.constant 0 : i32
    return %c0_i32, %c0_i32_0 : i32, i32
  }
  func.func @transform_2(%arg0: i32) -> (i32, i32, i32) {
    %c0_i32 = arith.constant 0 : i32
    %c0_i32_0 = arith.constant 0 : i32
    %c0_i32_1 = arith.constant 0 : i32
    return %arg0, %c0_i32, %c0_i32_0 : i32, i32, i32
  }
  func.func @transform_3(%arg0: i32) -> (i32, i32, i32) {
    %c0_i32 = arith.constant 0 : i32
    %c0_i32_0 = arith.constant 0 : i32
    %c0_i32_1 = arith.constant 0 : i32
    return %arg0, %c0_i32, %c0_i32_0 : i32, i32, i32
  }
}

module attributes {stable_mosaic.version = 11 : i64} {
  func.func @kernel(%arg0: i32, %arg1: memref<32x12xbf16, #tpu.memory_space<vmem>>, %arg2: memref<12x32xbf16, #tpu.memory_space<vmem>>, %arg3: memref<32x32xbf16, #tpu.memory_space<vmem>>) attributes {dimension_semantics = [#tpu.dimension_semantics<parallel>], iteration_bounds = array<i64: 1>, scalar_prefetch = 0 : i64, scratch_operands = 0 : i64, tpu.core_type = #tpu.core_type<tc>, window_params = [{transform_indices = @transform_0, window_bounds = array<i64: 32, 12>}, {pipeline_mode = #tpu.pipeline_mode<synchronous>, transform_indices = @transform_1, window_bounds = array<i64: 12, 32>}, {transform_indices = @transform_2, window_bounds = array<i64: 32, 32>}]} {
    %c0 = arith.constant 0 : index
    %c0_0 = arith.constant 0 : index
    %0 = vector.load %arg1[%c0, %c0_0] : memref<32x12xbf16, #tpu.memory_space<vmem>>, vector<32x12xbf16>
    %c0_1 = arith.constant 0 : index
    %c0_2 = arith.constant 0 : index
    %1 = vector.load %arg2[%c0_1, %c0_2] : memref<12x32xbf16, #tpu.memory_space<vmem>>, vector<12x32xbf16>
    %cst = arith.constant dense<0.000000e+00> : vector<32x32xf32>
    %2 = tpu.matmul %0, %1, %cst {dimension_numbers = #tpu.dot_dimension_numbers<[1], [0], [0], [1], [0, 0, 1, 1], [], []>} : vector<32x12xbf16>, vector<12x32xbf16>, vector<32x32xf32> -> vector<32x32xf32>
    %3 = arith.truncf %2 : vector<32x32xf32> to vector<32x32xbf16>
    %c0_3 = arith.constant 0 : index
    %c0_4 = arith.constant 0 : index
    %4 = vector.load %arg3[%c0_3, %c0_4] : memref<32x32xbf16, #tpu.memory_space<vmem>>, vector<32x32xbf16>
    tpu.vector_store %arg3[%c0_3, %c0_4], %3 {strides = array<i32>} : memref<32x32xbf16, #tpu.memory_space<vmem>>, vector<32x32xbf16>,
    return
  }
  func.func @transform_0(%arg0: i32) -> (i32, i32) {
    %c0_i32 = arith.constant 0 : i32
    %c0_i32_0 = arith.constant 0 : i32
    return %arg0, %c0_i32 : i32, i32
  }
  func.func @transform_1(%arg0: i32) -> (i32, i32) {
    %c0_i32 = arith.constant 0 : i32
    %c0_i32_0 = arith.constant 0 : i32
    %c0_i32_1 = arith.constant 0 : i32
    return %c0_i32, %c0_i32_0 : i32, i32
  }
  func.func @transform_2(%arg0: i32) -> (i32, i32) {
    %c0_i32 = arith.constant 0 : i32
    %c0_i32_0 = arith.constant 0 : i32
    return %arg0, %c0_i32 : i32, i32
  }
}

module attributes {stable_mosaic.version = 11 : i64} {
  func.func @kernel(%arg0: i32, %arg1: memref<32x32xbf16, #tpu.memory_space<vmem>>, %arg2: memref<32x96xbf16, #tpu.memory_space<vmem>>, %arg3: memref<1x96xf32, #tpu.memory_space<vmem>>, %arg4: memref<32x96xbf16, #tpu.memory_space<vmem>>) attributes {dimension_semantics = [#tpu.dimension_semantics<parallel>], iteration_bounds = array<i64: 1>, scalar_prefetch = 0 : i64, scratch_operands = 0 : i64, tpu.core_type = #tpu.core_type<tc>, window_params = [{transform_indices = @transform_0, window_bounds = array<i64: 32, 32>}, {pipeline_mode = #tpu.pipeline_mode<synchronous>, transform_indices = @transform_1, window_bounds = array<i64: 32, 96>}, {pipeline_mode = #tpu.pipeline_mode<synchronous>, transform_indices = @transform_2, window_bounds = array<i64: 1, 96>}, {transform_indices = @transform_3, window_bounds = array<i64: 32, 96>}]} {
    %c0 = arith.constant 0 : index
    %c0_0 = arith.constant 0 : index
    %0 = vector.load %arg1[%c0, %c0_0] : memref<32x32xbf16, #tpu.memory_space<vmem>>, vector<32x32xbf16>
    %c0_1 = arith.constant 0 : index
    %c0_2 = arith.constant 0 : index
    %1 = vector.load %arg2[%c0_1, %c0_2] : memref<32x96xbf16, #tpu.memory_space<vmem>>, vector<32x96xbf16>
    %cst = arith.constant dense<0.000000e+00> : vector<32x96xf32>
    %2 = tpu.matmul %0, %1, %cst {dimension_numbers = #tpu.dot_dimension_numbers<[1], [0], [0], [1], [0, 0, 1, 1], [], []>} : vector<32x32xbf16>, vector<32x96xbf16>, vector<32x96xf32> -> vector<32x96xf32>
    %c0_3 = arith.constant 0 : index
    %c0_4 = arith.constant 0 : index
    %3 = vector.load %arg3[%c0_3, %c0_4] : memref<1x96xf32, #tpu.memory_space<vmem>>, vector<1x96xf32>
    %4 = vector.broadcast %3 : vector<1x96xf32> to vector<32x96xf32>
    %5 = arith.addf %2, %4 : vector<32x96xf32>
    %6 = arith.truncf %5 : vector<32x96xf32> to vector<32x96xbf16>
    %c0_5 = arith.constant 0 : index
    %c0_6 = arith.constant 0 : index
    %7 = vector.load %arg4[%c0_5, %c0_6] : memref<32x96xbf16, #tpu.memory_space<vmem>>, vector<32x96xbf16>
    tpu.vector_store %arg4[%c0_5, %c0_6], %6 {strides = array<i32>} : memref<32x96xbf16, #tpu.memory_space<vmem>>, vector<32x96xbf16>,
    return
  }
  func.func @transform_0(%arg0: i32) -> (i32, i32) {
    %c0_i32 = arith.constant 0 : i32
    %c0_i32_0 = arith.constant 0 : i32
    return %arg0, %c0_i32 : i32, i32
  }
  func.func @transform_1(%arg0: i32) -> (i32, i32) {
    %c0_i32 = arith.constant 0 : i32
    %c0_i32_0 = arith.constant 0 : i32
    %c0_i32_1 = arith.constant 0 : i32
    return %c0_i32, %c0_i32_0 : i32, i32
  }
  func.func @transform_2(%arg0: i32) -> (i32, i32) {
    %c0_i32 = arith.constant 0 : i32
    %c0_i32_0 = arith.constant 0 : i32
    %c0_i32_1 = arith.constant 0 : i32
    return %c0_i32, %c0_i32_0 : i32, i32
  }
  func.func @transform_3(%arg0: i32) -> (i32, i32) {
    %c0_i32 = arith.constant 0 : i32
    %c0_i32_0 = arith.constant 0 : i32
    return %arg0, %c0_i32 : i32, i32
  }
}

module attributes {stable_mosaic.version = 11 : i64} {
  func.func @_agg_proj_kernel(%arg0: i32, %arg1: memref<2x2xi32, #tpu.memory_space<smem>>, %arg2: memref<2x2xf32, #tpu.memory_space<smem>>, %arg3: memref<1x16x32xbf16, #tpu.memory_space<vmem>>, %arg4: memref<32x32xbf16, #tpu.memory_space<vmem>>, %arg5: memref<1x32xf32, #tpu.memory_space<vmem>>, %arg6: memref<1x16x32xbf16, #tpu.memory_space<vmem>>, %arg7: memref<32x32xf32, #tpu.memory_space<vmem>>, %arg8: memref<16x32xf32, #tpu.memory_space<vmem>>) attributes {dimension_semantics = [#tpu.dimension_semantics<parallel>], iteration_bounds = array<i64: 2>, scalar_prefetch = 0 : i64, scratch_operands = 2 : i64, tpu.core_type = #tpu.core_type<tc>, window_params = [{transform_indices = @transform_0, window_bounds = array<i64: 2, 2>}, {transform_indices = @transform_1, window_bounds = array<i64: 2, 2>}, {transform_indices = @transform_2, window_bounds = array<i64: 1, 16, 32>}, {pipeline_mode = #tpu.pipeline_mode<synchronous>, transform_indices = @transform_3, window_bounds = array<i64: 32, 32>}, {pipeline_mode = #tpu.pipeline_mode<synchronous>, transform_indices = @transform_4, window_bounds = array<i64: 1, 32>}, {transform_indices = @transform_5, window_bounds = array<i64: 1, 16, 32>}]} {
    %c0 = arith.constant 0 : index
    %c0_0 = arith.constant 0 : index
    %c0_1 = arith.constant 0 : index
    %0 = vector.load %arg3[%c0, %c0_0, %c0_1] : memref<1x16x32xbf16, #tpu.memory_space<vmem>>, vector<1x16x32xbf16>
    %1 = vector.shape_cast %0 : vector<1x16x32xbf16> to vector<16x32xbf16>
    %2 = arith.extf %1 : vector<16x32xbf16> to vector<16x32xf32>
    %c0_2 = arith.constant 0 : index
    %c0_3 = arith.constant 0 : index
    %3 = vector.load %arg7[%c0_2, %c0_3] : memref<32x32xf32, #tpu.memory_space<vmem>>, vector<16x32xf32>
    tpu.vector_store %arg7[%c0_2, %c0_3], %2 {strides = array<i32>} : memref<32x32xf32, #tpu.memory_space<vmem>>, vector<16x32xf32>,
    %c16 = arith.constant 16 : index
    %c0_4 = arith.constant 0 : index
    %4 = vector.load %arg7[%c16, %c0_4] : memref<32x32xf32, #tpu.memory_space<vmem>>, vector<16x32xf32>
    tpu.vector_store %arg7[%c16, %c0_4], %2 {strides = array<i32>} : memref<32x32xf32, #tpu.memory_space<vmem>>, vector<16x32xf32>,
    %cst = arith.constant 0.000000e+00 : f32
    %5 = vector.broadcast %cst : f32 to vector<16x32xf32>
    %c0_5 = arith.constant 0 : index
    %c0_6 = arith.constant 0 : index
    %6 = vector.load %arg8[%c0_5, %c0_6] : memref<16x32xf32, #tpu.memory_space<vmem>>, vector<16x32xf32>
    tpu.vector_store %arg8[%c0_5, %c0_6], %5 {strides = array<i32>} : memref<16x32xf32, #tpu.memory_space<vmem>>, vector<16x32xf32>,
    %7 = arith.index_cast %arg0 : i32 to index
    %c0_7 = arith.constant 0 : index
    %8 = memref.load %arg1[%7, %c0_7] : memref<2x2xi32, #tpu.memory_space<smem>>
    %9 = arith.index_cast %arg0 : i32 to index
    %c0_8 = arith.constant 0 : index
    %10 = memref.load %arg2[%9, %c0_8] : memref<2x2xf32, #tpu.memory_space<smem>>
    %11 = arith.index_cast %8 : i32 to index
    %c0_9 = arith.constant 0 : index
    %12 = vector.load %arg7[%11, %c0_9] : memref<32x32xf32, #tpu.memory_space<vmem>>, vector<16x32xf32>
    %c0_10 = arith.constant 0 : index
    %c0_11 = arith.constant 0 : index
    %13 = vector.load %arg8[%c0_10, %c0_11] : memref<16x32xf32, #tpu.memory_space<vmem>>, vector<16x32xf32>
    %14 = vector.broadcast %10 : f32 to vector<16x32xf32>
    %15 = arith.mulf %14, %12 : vector<16x32xf32>
    %16 = arith.addf %13, %15 : vector<16x32xf32>
    %c0_12 = arith.constant 0 : index
    %c0_13 = arith.constant 0 : index
    %17 = vector.load %arg8[%c0_12, %c0_13] : memref<16x32xf32, #tpu.memory_space<vmem>>, vector<16x32xf32>
    tpu.vector_store %arg8[%c0_12, %c0_13], %16 {strides = array<i32>} : memref<16x32xf32, #tpu.memory_space<vmem>>, vector<16x32xf32>,
    %18 = arith.index_cast %arg0 : i32 to index
    %c1 = arith.constant 1 : index
    %19 = memref.load %arg1[%18, %c1] : memref<2x2xi32, #tpu.memory_space<smem>>
    %20 = arith.index_cast %arg0 : i32 to index
    %c1_14 = arith.constant 1 : index
    %21 = memref.load %arg2[%20, %c1_14] : memref<2x2xf32, #tpu.memory_space<smem>>
    %22 = arith.index_cast %19 : i32 to index
    %c0_15 = arith.constant 0 : index
    %23 = vector.load %arg7[%22, %c0_15] : memref<32x32xf32, #tpu.memory_space<vmem>>, vector<16x32xf32>
    %c0_16 = arith.constant 0 : index
    %c0_17 = arith.constant 0 : index
    %24 = vector.load %arg8[%c0_16, %c0_17] : memref<16x32xf32, #tpu.memory_space<vmem>>, vector<16x32xf32>
    %25 = vector.broadcast %21 : f32 to vector<16x32xf32>
    %26 = arith.mulf %25, %23 : vector<16x32xf32>
    %27 = arith.addf %24, %26 : vector<16x32xf32>
    %c0_18 = arith.constant 0 : index
    %c0_19 = arith.constant 0 : index
    %28 = vector.load %arg8[%c0_18, %c0_19] : memref<16x32xf32, #tpu.memory_space<vmem>>, vector<16x32xf32>
    tpu.vector_store %arg8[%c0_18, %c0_19], %27 {strides = array<i32>} : memref<16x32xf32, #tpu.memory_space<vmem>>, vector<16x32xf32>,
    %c0_20 = arith.constant 0 : index
    %c0_21 = arith.constant 0 : index
    %29 = vector.load %arg8[%c0_20, %c0_21] : memref<16x32xf32, #tpu.memory_space<vmem>>, vector<16x32xf32>
    %c0_22 = arith.constant 0 : index
    %c0_23 = arith.constant 0 : index
    %30 = vector.load %arg4[%c0_22, %c0_23] : memref<32x32xbf16, #tpu.memory_space<vmem>>, vector<32x32xbf16>
    %31 = arith.truncf %29 : vector<16x32xf32> to vector<16x32xbf16>
    %cst_24 = arith.constant dense<0.000000e+00> : vector<16x32xf32>
    %32 = tpu.matmul %31, %30, %cst_24 {dimension_numbers = #tpu.dot_dimension_numbers<[1], [0], [0], [1], [0, 0, 1, 1], [], []>} : vector<16x32xbf16>, vector<32x32xbf16>, vector<16x32xf32> -> vector<16x32xf32>
    %c0_25 = arith.constant 0 : index
    %c0_26 = arith.constant 0 : index
    %33 = vector.load %arg5[%c0_25, %c0_26] : memref<1x32xf32, #tpu.memory_space<vmem>>, vector<1x32xf32>
    %34 = vector.broadcast %33 : vector<1x32xf32> to vector<16x32xf32>
    %35 = arith.addf %32, %34 : vector<16x32xf32>
    %36 = arith.truncf %35 : vector<16x32xf32> to vector<16x32xbf16>
    %c0_27 = arith.constant 0 : index
    %c0_28 = arith.constant 0 : index
    %c0_29 = arith.constant 0 : index
    %37 = vector.load %arg6[%c0_27, %c0_28, %c0_29] : memref<1x16x32xbf16, #tpu.memory_space<vmem>>, vector<1x16x32xbf16>
    %38 = vector.shape_cast %37 : vector<1x16x32xbf16> to vector<16x32xbf16>
    %39 = vector.shape_cast %36 : vector<16x32xbf16> to vector<1x16x32xbf16>
    tpu.vector_store %arg6[%c0_27, %c0_28, %c0_29], %39 {strides = array<i32>} : memref<1x16x32xbf16, #tpu.memory_space<vmem>>, vector<1x16x32xbf16>,
    return
  }
  func.func @transform_0(%arg0: i32) -> (i32, i32) {
    %c0_i32 = arith.constant 0 : i32
    %c0_i32_0 = arith.constant 0 : i32
    %c0_i32_1 = arith.constant 0 : i32
    return %c0_i32, %c0_i32_0 : i32, i32
  }
  func.func @transform_1(%arg0: i32) -> (i32, i32) {
    %c0_i32 = arith.constant 0 : i32
    %c0_i32_0 = arith.constant 0 : i32
    %c0_i32_1 = arith.constant 0 : i32
    return %c0_i32, %c0_i32_0 : i32, i32
  }
  func.func @transform_2(%arg0: i32) -> (i32, i32, i32) {
    %c0_i32 = arith.constant 0 : i32
    %c0_i32_0 = arith.constant 0 : i32
    %c0_i32_1 = arith.constant 0 : i32
    return %arg0, %c0_i32, %c0_i32_0 : i32, i32, i32
  }
  func.func @transform_3(%arg0: i32) -> (i32, i32) {
    %c0_i32 = arith.constant 0 : i32
    %c0_i32_0 = arith.constant 0 : i32
    %c0_i32_1 = arith.constant 0 : i32
    return %c0_i32, %c0_i32_0 : i32, i32
  }
  func.func @transform_4(%arg0: i32) -> (i32, i32) {
    %c0_i32 = arith.constant 0 : i32
    %c0_i32_0 = arith.constant 0 : i32
    %c0_i32_1 = arith.constant 0 : i32
    return %c0_i32, %c0_i32_0 : i32, i32
  }
  func.func @transform_5(%arg0: i32) -> (i32, i32, i32) {
    %c0_i32 = arith.constant 0 : i32
    %c0_i32_0 = arith.constant 0 : i32
    %c0_i32_1 = arith.constant 0 : i32
    return %arg0, %c0_i32, %c0_i32_0 : i32, i32, i32
  }
}

module attributes {stable_mosaic.version = 11 : i64} {
  func.func @kernel(%arg0: i32, %arg1: memref<1x16x32xbf16, #tpu.memory_space<vmem>>, %arg2: memref<1x16x32xbf16, #tpu.memory_space<vmem>>, %arg3: memref<16x16xbf16, #tpu.memory_space<vmem>>, %arg4: memref<1x16x32xbf16, #tpu.memory_space<vmem>>, %arg5: memref<1x16x32xbf16, #tpu.memory_space<vmem>>) attributes {dimension_semantics = [#tpu.dimension_semantics<parallel>], iteration_bounds = array<i64: 2>, scalar_prefetch = 0 : i64, scratch_operands = 0 : i64, tpu.core_type = #tpu.core_type<tc>, window_params = [{transform_indices = @transform_0, window_bounds = array<i64: 1, 16, 32>}, {transform_indices = @transform_1, window_bounds = array<i64: 1, 16, 32>}, {pipeline_mode = #tpu.pipeline_mode<synchronous>, transform_indices = @transform_2, window_bounds = array<i64: 16, 16>}, {transform_indices = @transform_3, window_bounds = array<i64: 1, 16, 32>}, {transform_indices = @transform_4, window_bounds = array<i64: 1, 16, 32>}]} {
    %c0 = arith.constant 0 : index
    %c0_0 = arith.constant 0 : index
    %c0_1 = arith.constant 0 : index
    %0 = vector.load %arg1[%c0, %c0_0, %c0_1] : memref<1x16x32xbf16, #tpu.memory_space<vmem>>, vector<1x16x32xbf16>
    %1 = vector.shape_cast %0 : vector<1x16x32xbf16> to vector<16x32xbf16>
    %2 = arith.extf %1 : vector<16x32xbf16> to vector<16x32xf32>
    %c0_2 = arith.constant 0 : index
    %c0_3 = arith.constant 0 : index
    %c0_4 = arith.constant 0 : index
    %3 = vector.load %arg2[%c0_2, %c0_3, %c0_4] : memref<1x16x32xbf16, #tpu.memory_space<vmem>>, vector<1x16x32xbf16>
    %4 = vector.shape_cast %3 : vector<1x16x32xbf16> to vector<16x32xbf16>
    %5 = arith.extf %4 : vector<16x32xbf16> to vector<16x32xf32>
    %6 = arith.addf %2, %5 : vector<16x32xf32>
    %c0_5 = arith.constant 0 : index
    %c0_6 = arith.constant 0 : index
    %7 = vector.load %arg3[%c0_5, %c0_6] : memref<16x16xbf16, #tpu.memory_space<vmem>>, vector<16x16xbf16>
    %8 = arith.truncf %6 : vector<16x32xf32> to vector<16x32xbf16>
    %cst = arith.constant dense<0.000000e+00> : vector<16x32xf32>
    %9 = tpu.matmul %7, %8, %cst {dimension_numbers = #tpu.dot_dimension_numbers<[1], [0], [0], [1], [0, 0, 1, 1], [], []>} : vector<16x16xbf16>, vector<16x32xbf16>, vector<16x32xf32> -> vector<16x32xf32>
    %10 = arith.subf %6, %9 : vector<16x32xf32>
    %11 = arith.truncf %10 : vector<16x32xf32> to vector<16x32xbf16>
    %c0_7 = arith.constant 0 : index
    %c0_8 = arith.constant 0 : index
    %c0_9 = arith.constant 0 : index
    %12 = vector.load %arg4[%c0_7, %c0_8, %c0_9] : memref<1x16x32xbf16, #tpu.memory_space<vmem>>, vector<1x16x32xbf16>
    %13 = vector.shape_cast %12 : vector<1x16x32xbf16> to vector<16x32xbf16>
    %14 = vector.shape_cast %11 : vector<16x32xbf16> to vector<1x16x32xbf16>
    tpu.vector_store %arg4[%c0_7, %c0_8, %c0_9], %14 {strides = array<i32>} : memref<1x16x32xbf16, #tpu.memory_space<vmem>>, vector<1x16x32xbf16>,
    %15 = arith.truncf %9 : vector<16x32xf32> to vector<16x32xbf16>
    %c0_10 = arith.constant 0 : index
    %c0_11 = arith.constant 0 : index
    %c0_12 = arith.constant 0 : index
    %16 = vector.load %arg5[%c0_10, %c0_11, %c0_12] : memref<1x16x32xbf16, #tpu.memory_space<vmem>>, vector<1x16x32xbf16>
    %17 = vector.shape_cast %16 : vector<1x16x32xbf16> to vector<16x32xbf16>
    %18 = vector.shape_cast %15 : vector<16x32xbf16> to vector<1x16x32xbf16>
    tpu.vector_store %arg5[%c0_10, %c0_11, %c0_12], %18 {strides = array<i32>} : memref<1x16x32xbf16, #tpu.memory_space<vmem>>, vector<1x16x32xbf16>,
    return
  }
  func.func @transform_0(%arg0: i32) -> (i32, i32, i32) {
    %c0_i32 = arith.constant 0 : i32
    %c0_i32_0 = arith.constant 0 : i32
    %c0_i32_1 = arith.constant 0 : i32
    return %arg0, %c0_i32, %c0_i32_0 : i32, i32, i32
  }
  func.func @transform_1(%arg0: i32) -> (i32, i32, i32) {
    %c0_i32 = arith.constant 0 : i32
    %c0_i32_0 = arith.constant 0 : i32
    %c0_i32_1 = arith.constant 0 : i32
    return %arg0, %c0_i32, %c0_i32_0 : i32, i32, i32
  }
  func.func @transform_2(%arg0: i32) -> (i32, i32) {
    %c0_i32 = arith.constant 0 : i32
    %c0_i32_0 = arith.constant 0 : i32
    %c0_i32_1 = arith.constant 0 : i32
    return %c0_i32, %c0_i32_0 : i32, i32
  }
  func.func @transform_3(%arg0: i32) -> (i32, i32, i32) {
    %c0_i32 = arith.constant 0 : i32
    %c0_i32_0 = arith.constant 0 : i32
    %c0_i32_1 = arith.constant 0 : i32
    return %arg0, %c0_i32, %c0_i32_0 : i32, i32, i32
  }
  func.func @transform_4(%arg0: i32) -> (i32, i32, i32) {
    %c0_i32 = arith.constant 0 : i32
    %c0_i32_0 = arith.constant 0 : i32
    %c0_i32_1 = arith.constant 0 : i32
    return %arg0, %c0_i32, %c0_i32_0 : i32, i32, i32
  }
}

module attributes {stable_mosaic.version = 11 : i64} {
  func.func @kernel(%arg0: i32, %arg1: memref<32x32xbf16, #tpu.memory_space<vmem>>, %arg2: memref<32x32xbf16, #tpu.memory_space<vmem>>, %arg3: memref<1x32xf32, #tpu.memory_space<vmem>>, %arg4: memref<32x32xbf16, #tpu.memory_space<vmem>>) attributes {dimension_semantics = [#tpu.dimension_semantics<parallel>], iteration_bounds = array<i64: 1>, scalar_prefetch = 0 : i64, scratch_operands = 0 : i64, tpu.core_type = #tpu.core_type<tc>, window_params = [{transform_indices = @transform_0, window_bounds = array<i64: 32, 32>}, {pipeline_mode = #tpu.pipeline_mode<synchronous>, transform_indices = @transform_1, window_bounds = array<i64: 32, 32>}, {pipeline_mode = #tpu.pipeline_mode<synchronous>, transform_indices = @transform_2, window_bounds = array<i64: 1, 32>}, {transform_indices = @transform_3, window_bounds = array<i64: 32, 32>}]} {
    %c0 = arith.constant 0 : index
    %c0_0 = arith.constant 0 : index
    %0 = vector.load %arg1[%c0, %c0_0] : memref<32x32xbf16, #tpu.memory_space<vmem>>, vector<32x32xbf16>
    %c0_1 = arith.constant 0 : index
    %c0_2 = arith.constant 0 : index
    %1 = vector.load %arg2[%c0_1, %c0_2] : memref<32x32xbf16, #tpu.memory_space<vmem>>, vector<32x32xbf16>
    %cst = arith.constant dense<0.000000e+00> : vector<32x32xf32>
    %2 = tpu.matmul %0, %1, %cst {dimension_numbers = #tpu.dot_dimension_numbers<[1], [0], [0], [1], [0, 0, 1, 1], [], []>} : vector<32x32xbf16>, vector<32x32xbf16>, vector<32x32xf32> -> vector<32x32xf32>
    %c0_3 = arith.constant 0 : index
    %c0_4 = arith.constant 0 : index
    %3 = vector.load %arg3[%c0_3, %c0_4] : memref<1x32xf32, #tpu.memory_space<vmem>>, vector<1x32xf32>
    %4 = vector.broadcast %3 : vector<1x32xf32> to vector<32x32xf32>
    %5 = arith.addf %2, %4 : vector<32x32xf32>
    %6 = arith.truncf %5 : vector<32x32xf32> to vector<32x32xbf16>
    %c0_5 = arith.constant 0 : index
    %c0_6 = arith.constant 0 : index
    %7 = vector.load %arg4[%c0_5, %c0_6] : memref<32x32xbf16, #tpu.memory_space<vmem>>, vector<32x32xbf16>
    tpu.vector_store %arg4[%c0_5, %c0_6], %6 {strides = array<i32>} : memref<32x32xbf16, #tpu.memory_space<vmem>>, vector<32x32xbf16>,
    return
  }
  func.func @transform_0(%arg0: i32) -> (i32, i32) {
    %c0_i32 = arith.constant 0 : i32
    %c0_i32_0 = arith.constant 0 : i32
    return %arg0, %c0_i32 : i32, i32
  }
  func.func @transform_1(%arg0: i32) -> (i32, i32) {
    %c0_i32 = arith.constant 0 : i32
    %c0_i32_0 = arith.constant 0 : i32
    %c0_i32_1 = arith.constant 0 : i32
    return %c0_i32, %c0_i32_0 : i32, i32
  }
  func.func @transform_2(%arg0: i32) -> (i32, i32) {
    %c0_i32 = arith.constant 0 : i32
    %c0_i32_0 = arith.constant 0 : i32
    %c0_i32_1 = arith.constant 0 : i32
    return %c0_i32, %c0_i32_0 : i32, i32
  }
  func.func @transform_3(%arg0: i32) -> (i32, i32) {
    %c0_i32 = arith.constant 0 : i32
    %c0_i32_0 = arith.constant 0 : i32
    return %arg0, %c0_i32 : i32, i32
  }
}

module attributes {stable_mosaic.version = 11 : i64} {
  func.func @kernel(%arg0: i32, %arg1: memref<1x16x32xbf16, #tpu.memory_space<vmem>>, %arg2: memref<1x16x32xbf16, #tpu.memory_space<vmem>>, %arg3: memref<16x16xbf16, #tpu.memory_space<vmem>>, %arg4: memref<1x16x32xbf16, #tpu.memory_space<vmem>>) attributes {dimension_semantics = [#tpu.dimension_semantics<parallel>], iteration_bounds = array<i64: 2>, scalar_prefetch = 0 : i64, scratch_operands = 0 : i64, tpu.core_type = #tpu.core_type<tc>, window_params = [{transform_indices = @transform_0, window_bounds = array<i64: 1, 16, 32>}, {transform_indices = @transform_1, window_bounds = array<i64: 1, 16, 32>}, {pipeline_mode = #tpu.pipeline_mode<synchronous>, transform_indices = @transform_2, window_bounds = array<i64: 16, 16>}, {transform_indices = @transform_3, window_bounds = array<i64: 1, 16, 32>}]} {
    %c0 = arith.constant 0 : index
    %c0_0 = arith.constant 0 : index
    %c0_1 = arith.constant 0 : index
    %0 = vector.load %arg1[%c0, %c0_0, %c0_1] : memref<1x16x32xbf16, #tpu.memory_space<vmem>>, vector<1x16x32xbf16>
    %1 = vector.shape_cast %0 : vector<1x16x32xbf16> to vector<16x32xbf16>
    %2 = arith.extf %1 : vector<16x32xbf16> to vector<16x32xf32>
    %c0_2 = arith.constant 0 : index
    %c0_3 = arith.constant 0 : index
    %c0_4 = arith.constant 0 : index
    %3 = vector.load %arg2[%c0_2, %c0_3, %c0_4] : memref<1x16x32xbf16, #tpu.memory_space<vmem>>, vector<1x16x32xbf16>
    %4 = vector.shape_cast %3 : vector<1x16x32xbf16> to vector<16x32xbf16>
    %5 = arith.extf %4 : vector<16x32xbf16> to vector<16x32xf32>
    %6 = arith.addf %2, %5 : vector<16x32xf32>
    %c0_5 = arith.constant 0 : index
    %c0_6 = arith.constant 0 : index
    %7 = vector.load %arg3[%c0_5, %c0_6] : memref<16x16xbf16, #tpu.memory_space<vmem>>, vector<16x16xbf16>
    %8 = arith.truncf %6 : vector<16x32xf32> to vector<16x32xbf16>
    %cst = arith.constant dense<0.000000e+00> : vector<16x32xf32>
    %9 = tpu.matmul %7, %8, %cst {dimension_numbers = #tpu.dot_dimension_numbers<[1], [0], [0], [1], [0, 0, 1, 1], [], []>} : vector<16x16xbf16>, vector<16x32xbf16>, vector<16x32xf32> -> vector<16x32xf32>
    %10 = arith.subf %6, %9 : vector<16x32xf32>
    %11 = arith.truncf %10 : vector<16x32xf32> to vector<16x32xbf16>
    %c0_7 = arith.constant 0 : index
    %c0_8 = arith.constant 0 : index
    %c0_9 = arith.constant 0 : index
    %12 = vector.load %arg4[%c0_7, %c0_8, %c0_9] : memref<1x16x32xbf16, #tpu.memory_space<vmem>>, vector<1x16x32xbf16>
    %13 = vector.shape_cast %12 : vector<1x16x32xbf16> to vector<16x32xbf16>
    %14 = vector.shape_cast %11 : vector<16x32xbf16> to vector<1x16x32xbf16>
    tpu.vector_store %arg4[%c0_7, %c0_8, %c0_9], %14 {strides = array<i32>} : memref<1x16x32xbf16, #tpu.memory_space<vmem>>, vector<1x16x32xbf16>,
    return
  }
  func.func @transform_0(%arg0: i32) -> (i32, i32, i32) {
    %c0_i32 = arith.constant 0 : i32
    %c0_i32_0 = arith.constant 0 : i32
    %c0_i32_1 = arith.constant 0 : i32
    return %arg0, %c0_i32, %c0_i32_0 : i32, i32, i32
  }
  func.func @transform_1(%arg0: i32) -> (i32, i32, i32) {
    %c0_i32 = arith.constant 0 : i32
    %c0_i32_0 = arith.constant 0 : i32
    %c0_i32_1 = arith.constant 0 : i32
    return %arg0, %c0_i32, %c0_i32_0 : i32, i32, i32
  }
  func.func @transform_2(%arg0: i32) -> (i32, i32) {
    %c0_i32 = arith.constant 0 : i32
    %c0_i32_0 = arith.constant 0 : i32
    %c0_i32_1 = arith.constant 0 : i32
    return %c0_i32, %c0_i32_0 : i32, i32
  }
  func.func @transform_3(%arg0: i32) -> (i32, i32, i32) {
    %c0_i32 = arith.constant 0 : i32
    %c0_i32_0 = arith.constant 0 : i32
    %c0_i32_1 = arith.constant 0 : i32
    return %arg0, %c0_i32, %c0_i32_0 : i32, i32, i32
  }
}

module attributes {stable_mosaic.version = 11 : i64} {
  func.func @kernel(%arg0: i32, %arg1: memref<32x32xbf16, #tpu.memory_space<vmem>>, %arg2: memref<32x64xbf16, #tpu.memory_space<vmem>>, %arg3: memref<64x32xbf16, #tpu.memory_space<vmem>>, %arg4: memref<32x32xbf16, #tpu.memory_space<vmem>>) attributes {dimension_semantics = [#tpu.dimension_semantics<parallel>], iteration_bounds = array<i64: 1>, scalar_prefetch = 0 : i64, scratch_operands = 0 : i64, tpu.core_type = #tpu.core_type<tc>, window_params = [{transform_indices = @transform_0, window_bounds = array<i64: 32, 32>}, {pipeline_mode = #tpu.pipeline_mode<synchronous>, transform_indices = @transform_1, window_bounds = array<i64: 32, 64>}, {pipeline_mode = #tpu.pipeline_mode<synchronous>, transform_indices = @transform_2, window_bounds = array<i64: 64, 32>}, {transform_indices = @transform_3, window_bounds = array<i64: 32, 32>}]} {
    %c0 = arith.constant 0 : index
    %c0_0 = arith.constant 0 : index
    %0 = vector.load %arg1[%c0, %c0_0] : memref<32x32xbf16, #tpu.memory_space<vmem>>, vector<32x32xbf16>
    %c0_1 = arith.constant 0 : index
    %c0_2 = arith.constant 0 : index
    %1 = vector.load %arg2[%c0_1, %c0_2] : memref<32x64xbf16, #tpu.memory_space<vmem>>, vector<32x64xbf16>
    %cst = arith.constant dense<0.000000e+00> : vector<32x64xf32>
    %2 = tpu.matmul %0, %1, %cst {dimension_numbers = #tpu.dot_dimension_numbers<[1], [0], [0], [1], [0, 0, 1, 1], [], []>} : vector<32x32xbf16>, vector<32x64xbf16>, vector<32x64xf32> -> vector<32x64xf32>
    %cst_3 = arith.constant 0.000000e+00 : f32
    %3 = vector.broadcast %cst_3 : f32 to vector<32x64xf32>
    %4 = arith.maximumf %2, %3 : vector<32x64xf32>
    %c0_4 = arith.constant 0 : index
    %c0_5 = arith.constant 0 : index
    %5 = vector.load %arg3[%c0_4, %c0_5] : memref<64x32xbf16, #tpu.memory_space<vmem>>, vector<64x32xbf16>
    %6 = arith.truncf %4 : vector<32x64xf32> to vector<32x64xbf16>
    %cst_6 = arith.constant dense<0.000000e+00> : vector<32x32xf32>
    %7 = tpu.matmul %6, %5, %cst_6 {dimension_numbers = #tpu.dot_dimension_numbers<[1], [0], [0], [1], [0, 0, 1, 1], [], []>} : vector<32x64xbf16>, vector<64x32xbf16>, vector<32x32xf32> -> vector<32x32xf32>
    %8 = arith.extf %0 : vector<32x32xbf16> to vector<32x32xf32>
    %9 = arith.addf %8, %7 : vector<32x32xf32>
    %10 = arith.truncf %9 : vector<32x32xf32> to vector<32x32xbf16>
    %c0_7 = arith.constant 0 : index
    %c0_8 = arith.constant 0 : index
    %11 = vector.load %arg4[%c0_7, %c0_8] : memref<32x32xbf16, #tpu.memory_space<vmem>>, vector<32x32xbf16>
    tpu.vector_store %arg4[%c0_7, %c0_8], %10 {strides = array<i32>} : memref<32x32xbf16, #tpu.memory_space<vmem>>, vector<32x32xbf16>,
    return
  }
  func.func @transform_0(%arg0: i32) -> (i32, i32) {
    %c0_i32 = arith.constant 0 : i32
    %c0_i32_0 = arith.constant 0 : i32
    return %arg0, %c0_i32 : i32, i32
  }
  func.func @transform_1(%arg0: i32) -> (i32, i32) {
    %c0_i32 = arith.constant 0 : i32
    %c0_i32_0 = arith.constant 0 : i32
    %c0_i32_1 = arith.constant 0 : i32
    return %c0_i32, %c0_i32_0 : i32, i32
  }
  func.func @transform_2(%arg0: i32) -> (i32, i32) {
    %c0_i32 = arith.constant 0 : i32
    %c0_i32_0 = arith.constant 0 : i32
    %c0_i32_1 = arith.constant 0 : i32
    return %c0_i32, %c0_i32_0 : i32, i32
  }
  func.func @transform_3(%arg0: i32) -> (i32, i32) {
    %c0_i32 = arith.constant 0 : i32
    %c0_i32_0 = arith.constant 0 : i32
    return %arg0, %c0_i32 : i32, i32
  }
}

module attributes {stable_mosaic.version = 11 : i64} {
  func.func @_my_layernorm_kernel(%arg0: i32, %arg1: memref<1x16x32xbf16, #tpu.memory_space<vmem>>, %arg2: memref<1x32xf32, #tpu.memory_space<vmem>>, %arg3: memref<1x32xf32, #tpu.memory_space<vmem>>, %arg4: memref<1x16x32xbf16, #tpu.memory_space<vmem>>) attributes {dimension_semantics = [#tpu.dimension_semantics<parallel>], iteration_bounds = array<i64: 2>, scalar_prefetch = 0 : i64, scratch_operands = 0 : i64, tpu.core_type = #tpu.core_type<tc>, window_params = [{transform_indices = @transform_0, window_bounds = array<i64: 1, 16, 32>}, {pipeline_mode = #tpu.pipeline_mode<synchronous>, transform_indices = @transform_1, window_bounds = array<i64: 1, 32>}, {pipeline_mode = #tpu.pipeline_mode<synchronous>, transform_indices = @transform_2, window_bounds = array<i64: 1, 32>}, {transform_indices = @transform_3, window_bounds = array<i64: 1, 16, 32>}]} {
    %c0 = arith.constant 0 : index
    %c0_0 = arith.constant 0 : index
    %c0_1 = arith.constant 0 : index
    %0 = vector.load %arg1[%c0, %c0_0, %c0_1] : memref<1x16x32xbf16, #tpu.memory_space<vmem>>, vector<1x16x32xbf16>
    %1 = vector.shape_cast %0 : vector<1x16x32xbf16> to vector<16x32xbf16>
    %2 = arith.extf %1 : vector<16x32xbf16> to vector<16x32xf32>
    %cst = arith.constant dense<0.000000e+00> : vector<16xf32>
    %3 = vector.multi_reduction <add>, %2, %cst [1] : vector<16x32xf32> to vector<16xf32>
    %4 = vector.shape_cast %3 : vector<16xf32> to vector<16x1xf32>
    %cst_2 = arith.constant 3.200000e+01 : f32
    %5 = vector.broadcast %cst_2 : f32 to vector<16x1xf32>
    %6 = arith.divf %4, %5 : vector<16x1xf32>
    %7 = vector.broadcast %6 : vector<16x1xf32> to vector<16x32xf32>
    %8 = arith.subf %2, %7 : vector<16x32xf32>
    %9 = arith.mulf %8, %8 : vector<16x32xf32>
    %cst_3 = arith.constant dense<0.000000e+00> : vector<16xf32>
    %10 = vector.multi_reduction <add>, %9, %cst_3 [1] : vector<16x32xf32> to vector<16xf32>
    %11 = vector.shape_cast %10 : vector<16xf32> to vector<16x1xf32>
    %cst_4 = arith.constant 3.200000e+01 : f32
    %12 = vector.broadcast %cst_4 : f32 to vector<16x1xf32>
    %13 = arith.divf %11, %12 : vector<16x1xf32>
    %14 = vector.broadcast %6 : vector<16x1xf32> to vector<16x32xf32>
    %15 = arith.subf %2, %14 : vector<16x32xf32>
    %cst_5 = arith.constant 9.99999974E-6 : f32
    %16 = vector.broadcast %cst_5 : f32 to vector<16x1xf32>
    %17 = arith.addf %13, %16 : vector<16x1xf32>
    %18 = math.rsqrt %17 : vector<16x1xf32>
    %19 = vector.broadcast %18 : vector<16x1xf32> to vector<16x32xf32>
    %20 = arith.mulf %15, %19 : vector<16x32xf32>
    %c0_6 = arith.constant 0 : index
    %c0_7 = arith.constant 0 : index
    %21 = vector.load %arg2[%c0_6, %c0_7] : memref<1x32xf32, #tpu.memory_space<vmem>>, vector<1x32xf32>
    %22 = vector.broadcast %21 : vector<1x32xf32> to vector<16x32xf32>
    %23 = arith.mulf %20, %22 : vector<16x32xf32>
    %c0_8 = arith.constant 0 : index
    %c0_9 = arith.constant 0 : index
    %24 = vector.load %arg3[%c0_8, %c0_9] : memref<1x32xf32, #tpu.memory_space<vmem>>, vector<1x32xf32>
    %25 = vector.broadcast %24 : vector<1x32xf32> to vector<16x32xf32>
    %26 = arith.addf %23, %25 : vector<16x32xf32>
    %cst_10 = arith.constant dense<0.000000e+00> : vector<32xf32>
    %27 = vector.multi_reduction <add>, %26, %cst_10 [0] : vector<16x32xf32> to vector<32xf32>
    %28 = vector.shape_cast %27 : vector<32xf32> to vector<1x32xf32>
    %cst_11 = arith.constant 1.600000e+01 : f32
    %29 = vector.broadcast %cst_11 : f32 to vector<1x32xf32>
    %30 = arith.divf %28, %29 : vector<1x32xf32>
    %31 = vector.broadcast %30 : vector<1x32xf32> to vector<16x32xf32>
    %32 = arith.subf %26, %31 : vector<16x32xf32>
    %33 = arith.truncf %32 : vector<16x32xf32> to vector<16x32xbf16>
    %c0_12 = arith.constant 0 : index
    %c0_13 = arith.constant 0 : index
    %c0_14 = arith.constant 0 : index
    %34 = vector.load %arg4[%c0_12, %c0_13, %c0_14] : memref<1x16x32xbf16, #tpu.memory_space<vmem>>, vector<1x16x32xbf16>
    %35 = vector.shape_cast %34 : vector<1x16x32xbf16> to vector<16x32xbf16>
    %36 = vector.shape_cast %33 : vector<16x32xbf16> to vector<1x16x32xbf16>
    tpu.vector_store %arg4[%c0_12, %c0_13, %c0_14], %36 {strides = array<i32>} : memref<1x16x32xbf16, #tpu.memory_space<vmem>>, vector<1x16x32xbf16>,
    return
  }
  func.func @transform_0(%arg0: i32) -> (i32, i32, i32) {
    %c0_i32 = arith.constant 0 : i32
    %c0_i32_0 = arith.constant 0 : i32
    %c0_i32_1 = arith.constant 0 : i32
    return %arg0, %c0_i32, %c0_i32_0 : i32, i32, i32
  }
  func.func @transform_1(%arg0: i32) -> (i32, i32) {
    %c0_i32 = arith.constant 0 : i32
    %c0_i32_0 = arith.constant 0 : i32
    %c0_i32_1 = arith.constant 0 : i32
    return %c0_i32, %c0_i32_0 : i32, i32
  }
  func.func @transform_2(%arg0: i32) -> (i32, i32) {
    %c0_i32 = arith.constant 0 : i32
    %c0_i32_0 = arith.constant 0 : i32
    %c0_i32_1 = arith.constant 0 : i32
    return %c0_i32, %c0_i32_0 : i32, i32
  }
  func.func @transform_3(%arg0: i32) -> (i32, i32, i32) {
    %c0_i32 = arith.constant 0 : i32
    %c0_i32_0 = arith.constant 0 : i32
    %c0_i32_1 = arith.constant 0 : i32
    return %arg0, %c0_i32, %c0_i32_0 : i32, i32, i32
  }
}

module attributes {stable_mosaic.version = 11 : i64} {
  func.func @kernel(%arg0: i32, %arg1: memref<1x16x32xbf16, #tpu.memory_space<vmem>>, %arg2: memref<16x16xbf16, #tpu.memory_space<vmem>>, %arg3: memref<1x16x32xbf16, #tpu.memory_space<vmem>>) attributes {dimension_semantics = [#tpu.dimension_semantics<parallel>], iteration_bounds = array<i64: 2>, scalar_prefetch = 0 : i64, scratch_operands = 0 : i64, tpu.core_type = #tpu.core_type<tc>, window_params = [{transform_indices = @transform_0, window_bounds = array<i64: 1, 16, 32>}, {pipeline_mode = #tpu.pipeline_mode<synchronous>, transform_indices = @transform_1, window_bounds = array<i64: 16, 16>}, {transform_indices = @transform_2, window_bounds = array<i64: 1, 16, 32>}]} {
    %c0 = arith.constant 0 : index
    %c0_0 = arith.constant 0 : index
    %c0_1 = arith.constant 0 : index
    %0 = vector.load %arg1[%c0, %c0_0, %c0_1] : memref<1x16x32xbf16, #tpu.memory_space<vmem>>, vector<1x16x32xbf16>
    %1 = vector.shape_cast %0 : vector<1x16x32xbf16> to vector<16x32xbf16>
    %2 = arith.extf %1 : vector<16x32xbf16> to vector<16x32xf32>
    %c0_2 = arith.constant 0 : index
    %c0_3 = arith.constant 0 : index
    %3 = vector.load %arg2[%c0_2, %c0_3] : memref<16x16xbf16, #tpu.memory_space<vmem>>, vector<16x16xbf16>
    %4 = arith.truncf %2 : vector<16x32xf32> to vector<16x32xbf16>
    %cst = arith.constant dense<0.000000e+00> : vector<16x32xf32>
    %5 = tpu.matmul %3, %4, %cst {dimension_numbers = #tpu.dot_dimension_numbers<[1], [0], [0], [1], [0, 0, 1, 1], [], []>} : vector<16x16xbf16>, vector<16x32xbf16>, vector<16x32xf32> -> vector<16x32xf32>
    %6 = arith.subf %2, %5 : vector<16x32xf32>
    %7 = arith.truncf %6 : vector<16x32xf32> to vector<16x32xbf16>
    %c0_4 = arith.constant 0 : index
    %c0_5 = arith.constant 0 : index
    %c0_6 = arith.constant 0 : index
    %8 = vector.load %arg3[%c0_4, %c0_5, %c0_6] : memref<1x16x32xbf16, #tpu.memory_space<vmem>>, vector<1x16x32xbf16>
    %9 = vector.shape_cast %8 : vector<1x16x32xbf16> to vector<16x32xbf16>
    %10 = vector.shape_cast %7 : vector<16x32xbf16> to vector<1x16x32xbf16>
    tpu.vector_store %arg3[%c0_4, %c0_5, %c0_6], %10 {strides = array<i32>} : memref<1x16x32xbf16, #tpu.memory_space<vmem>>, vector<1x16x32xbf16>,
    return
  }
  func.func @transform_0(%arg0: i32) -> (i32, i32, i32) {
    %c0_i32 = arith.constant 0 : i32
    %c0_i32_0 = arith.constant 0 : i32
    %c0_i32_1 = arith.constant 0 : i32
    return %arg0, %c0_i32, %c0_i32_0 : i32, i32, i32
  }
  func.func @transform_1(%arg0: i32) -> (i32, i32) {
    %c0_i32 = arith.constant 0 : i32
    %c0_i32_0 = arith.constant 0 : i32
    %c0_i32_1 = arith.constant 0 : i32
    return %c0_i32, %c0_i32_0 : i32, i32
  }
  func.func @transform_2(%arg0: i32) -> (i32, i32, i32) {
    %c0_i32 = arith.constant 0 : i32
    %c0_i32_0 = arith.constant 0 : i32
    %c0_i32_1 = arith.constant 0 : i32
    return %arg0, %c0_i32, %c0_i32_0 : i32, i32, i32
  }
}

module attributes {stable_mosaic.version = 11 : i64} {
  func.func @kernel(%arg0: i32, %arg1: memref<32x32xbf16, #tpu.memory_space<vmem>>, %arg2: memref<32x64xbf16, #tpu.memory_space<vmem>>, %arg3: memref<1x64xf32, #tpu.memory_space<vmem>>, %arg4: memref<32x64xbf16, #tpu.memory_space<vmem>>) attributes {dimension_semantics = [#tpu.dimension_semantics<parallel>], iteration_bounds = array<i64: 1>, scalar_prefetch = 0 : i64, scratch_operands = 0 : i64, tpu.core_type = #tpu.core_type<tc>, window_params = [{transform_indices = @transform_0, window_bounds = array<i64: 32, 32>}, {pipeline_mode = #tpu.pipeline_mode<synchronous>, transform_indices = @transform_1, window_bounds = array<i64: 32, 64>}, {pipeline_mode = #tpu.pipeline_mode<synchronous>, transform_indices = @transform_2, window_bounds = array<i64: 1, 64>}, {transform_indices = @transform_3, window_bounds = array<i64: 32, 64>}]} {
    %c0 = arith.constant 0 : index
    %c0_0 = arith.constant 0 : index
    %0 = vector.load %arg1[%c0, %c0_0] : memref<32x32xbf16, #tpu.memory_space<vmem>>, vector<32x32xbf16>
    %c0_1 = arith.constant 0 : index
    %c0_2 = arith.constant 0 : index
    %1 = vector.load %arg2[%c0_1, %c0_2] : memref<32x64xbf16, #tpu.memory_space<vmem>>, vector<32x64xbf16>
    %cst = arith.constant dense<0.000000e+00> : vector<32x64xf32>
    %2 = tpu.matmul %0, %1, %cst {dimension_numbers = #tpu.dot_dimension_numbers<[1], [0], [0], [1], [0, 0, 1, 1], [], []>} : vector<32x32xbf16>, vector<32x64xbf16>, vector<32x64xf32> -> vector<32x64xf32>
    %c0_3 = arith.constant 0 : index
    %c0_4 = arith.constant 0 : index
    %3 = vector.load %arg3[%c0_3, %c0_4] : memref<1x64xf32, #tpu.memory_space<vmem>>, vector<1x64xf32>
    %4 = vector.broadcast %3 : vector<1x64xf32> to vector<32x64xf32>
    %5 = arith.addf %2, %4 : vector<32x64xf32>
    %6 = arith.truncf %5 : vector<32x64xf32> to vector<32x64xbf16>
    %c0_5 = arith.constant 0 : index
    %c0_6 = arith.constant 0 : index
    %7 = vector.load %arg4[%c0_5, %c0_6] : memref<32x64xbf16, #tpu.memory_space<vmem>>, vector<32x64xbf16>
    tpu.vector_store %arg4[%c0_5, %c0_6], %6 {strides = array<i32>} : memref<32x64xbf16, #tpu.memory_space<vmem>>, vector<32x64xbf16>,
    return
  }
  func.func @transform_0(%arg0: i32) -> (i32, i32) {
    %c0_i32 = arith.constant 0 : i32
    %c0_i32_0 = arith.constant 0 : i32
    return %arg0, %c0_i32 : i32, i32
  }
  func.func @transform_1(%arg0: i32) -> (i32, i32) {
    %c0_i32 = arith.constant 0 : i32
    %c0_i32_0 = arith.constant 0 : i32
    %c0_i32_1 = arith.constant 0 : i32
    return %c0_i32, %c0_i32_0 : i32, i32
  }
  func.func @transform_2(%arg0: i32) -> (i32, i32) {
    %c0_i32 = arith.constant 0 : i32
    %c0_i32_0 = arith.constant 0 : i32
    %c0_i32_1 = arith.constant 0 : i32
    return %c0_i32, %c0_i32_0 : i32, i32
  }
  func.func @transform_3(%arg0: i32) -> (i32, i32) {
    %c0_i32 = arith.constant 0 : i32
    %c0_i32_0 = arith.constant 0 : i32
    return %arg0, %c0_i32 : i32, i32
  }
}

module attributes {stable_mosaic.version = 11 : i64} {
  func.func @kernel(%arg0: i32, %arg1: memref<1x16x32xbf16, #tpu.memory_space<vmem>>, %arg2: memref<16x16xbf16, #tpu.memory_space<vmem>>, %arg3: memref<1x16x32xbf16, #tpu.memory_space<vmem>>, %arg4: memref<1x16x32xbf16, #tpu.memory_space<vmem>>) attributes {dimension_semantics = [#tpu.dimension_semantics<parallel>], iteration_bounds = array<i64: 2>, scalar_prefetch = 0 : i64, scratch_operands = 0 : i64, tpu.core_type = #tpu.core_type<tc>, window_params = [{transform_indices = @transform_0, window_bounds = array<i64: 1, 16, 32>}, {pipeline_mode = #tpu.pipeline_mode<synchronous>, transform_indices = @transform_1, window_bounds = array<i64: 16, 16>}, {transform_indices = @transform_2, window_bounds = array<i64: 1, 16, 32>}, {transform_indices = @transform_3, window_bounds = array<i64: 1, 16, 32>}]} {
    %c0 = arith.constant 0 : index
    %c0_0 = arith.constant 0 : index
    %c0_1 = arith.constant 0 : index
    %0 = vector.load %arg1[%c0, %c0_0, %c0_1] : memref<1x16x32xbf16, #tpu.memory_space<vmem>>, vector<1x16x32xbf16>
    %1 = vector.shape_cast %0 : vector<1x16x32xbf16> to vector<16x32xbf16>
    %2 = arith.extf %1 : vector<16x32xbf16> to vector<16x32xf32>
    %c0_2 = arith.constant 0 : index
    %c0_3 = arith.constant 0 : index
    %3 = vector.load %arg2[%c0_2, %c0_3] : memref<16x16xbf16, #tpu.memory_space<vmem>>, vector<16x16xbf16>
    %4 = arith.truncf %2 : vector<16x32xf32> to vector<16x32xbf16>
    %cst = arith.constant dense<0.000000e+00> : vector<16x32xf32>
    %5 = tpu.matmul %3, %4, %cst {dimension_numbers = #tpu.dot_dimension_numbers<[1], [0], [0], [1], [0, 0, 1, 1], [], []>} : vector<16x16xbf16>, vector<16x32xbf16>, vector<16x32xf32> -> vector<16x32xf32>
    %6 = arith.subf %2, %5 : vector<16x32xf32>
    %7 = arith.truncf %6 : vector<16x32xf32> to vector<16x32xbf16>
    %c0_4 = arith.constant 0 : index
    %c0_5 = arith.constant 0 : index
    %c0_6 = arith.constant 0 : index
    %8 = vector.load %arg3[%c0_4, %c0_5, %c0_6] : memref<1x16x32xbf16, #tpu.memory_space<vmem>>, vector<1x16x32xbf16>
    %9 = vector.shape_cast %8 : vector<1x16x32xbf16> to vector<16x32xbf16>
    %10 = vector.shape_cast %7 : vector<16x32xbf16> to vector<1x16x32xbf16>
    tpu.vector_store %arg3[%c0_4, %c0_5, %c0_6], %10 {strides = array<i32>} : memref<1x16x32xbf16, #tpu.memory_space<vmem>>, vector<1x16x32xbf16>,
    %11 = arith.truncf %5 : vector<16x32xf32> to vector<16x32xbf16>
    %c0_7 = arith.constant 0 : index
    %c0_8 = arith.constant 0 : index
    %c0_9 = arith.constant 0 : index
    %12 = vector.load %arg4[%c0_7, %c0_8, %c0_9] : memref<1x16x32xbf16, #tpu.memory_space<vmem>>, vector<1x16x32xbf16>
    %13 = vector.shape_cast %12 : vector<1x16x32xbf16> to vector<16x32xbf16>
    %14 = vector.shape_cast %11 : vector<16x32xbf16> to vector<1x16x32xbf16>
    tpu.vector_store %arg4[%c0_7, %c0_8, %c0_9], %14 {strides = array<i32>} : memref<1x16x32xbf16, #tpu.memory_space<vmem>>, vector<1x16x32xbf16>,
    return
  }
  func.func @transform_0(%arg0: i32) -> (i32, i32, i32) {
    %c0_i32 = arith.constant 0 : i32
    %c0_i32_0 = arith.constant 0 : i32
    %c0_i32_1 = arith.constant 0 : i32
    return %arg0, %c0_i32, %c0_i32_0 : i32, i32, i32
  }
  func.func @transform_1(%arg0: i32) -> (i32, i32) {
    %c0_i32 = arith.constant 0 : i32
    %c0_i32_0 = arith.constant 0 : i32
    %c0_i32_1 = arith.constant 0 : i32
    return %c0_i32, %c0_i32_0 : i32, i32
  }
  func.func @transform_2(%arg0: i32) -> (i32, i32, i32) {
    %c0_i32 = arith.constant 0 : i32
    %c0_i32_0 = arith.constant 0 : i32
    %c0_i32_1 = arith.constant 0 : i32
    return %arg0, %c0_i32, %c0_i32_0 : i32, i32, i32
  }
  func.func @transform_3(%arg0: i32) -> (i32, i32, i32) {
    %c0_i32 = arith.constant 0 : i32
    %c0_i32_0 = arith.constant 0 : i32
    %c0_i32_1 = arith.constant 0 : i32
    return %arg0, %c0_i32, %c0_i32_0 : i32, i32, i32
  }
}

module attributes {stable_mosaic.version = 11 : i64} {
  func.func @kernel(%arg0: i32, %arg1: memref<32x32xbf16, #tpu.memory_space<vmem>>, %arg2: memref<32x4xbf16, #tpu.memory_space<vmem>>, %arg3: memref<1x4xf32, #tpu.memory_space<vmem>>, %arg4: memref<32x4xf32, #tpu.memory_space<vmem>>, %arg5: memref<32x4xf32, #tpu.memory_space<vmem>>) attributes {dimension_semantics = [#tpu.dimension_semantics<parallel>], iteration_bounds = array<i64: 1>, scalar_prefetch = 0 : i64, scratch_operands = 0 : i64, tpu.core_type = #tpu.core_type<tc>, window_params = [{transform_indices = @transform_0, window_bounds = array<i64: 32, 32>}, {pipeline_mode = #tpu.pipeline_mode<synchronous>, transform_indices = @transform_1, window_bounds = array<i64: 32, 4>}, {pipeline_mode = #tpu.pipeline_mode<synchronous>, transform_indices = @transform_2, window_bounds = array<i64: 1, 4>}, {transform_indices = @transform_3, window_bounds = array<i64: 32, 4>}, {transform_indices = @transform_4, window_bounds = array<i64: 32, 4>}]} {
    %c0 = arith.constant 0 : index
    %c0_0 = arith.constant 0 : index
    %0 = vector.load %arg1[%c0, %c0_0] : memref<32x32xbf16, #tpu.memory_space<vmem>>, vector<32x32xbf16>
    %c0_1 = arith.constant 0 : index
    %c0_2 = arith.constant 0 : index
    %1 = vector.load %arg2[%c0_1, %c0_2] : memref<32x4xbf16, #tpu.memory_space<vmem>>, vector<32x4xbf16>
    %cst = arith.constant dense<0.000000e+00> : vector<32x4xf32>
    %2 = tpu.matmul %0, %1, %cst {dimension_numbers = #tpu.dot_dimension_numbers<[1], [0], [0], [1], [0, 0, 1, 1], [], []>} : vector<32x32xbf16>, vector<32x4xbf16>, vector<32x4xf32> -> vector<32x4xf32>
    %c0_3 = arith.constant 0 : index
    %c0_4 = arith.constant 0 : index
    %3 = vector.load %arg3[%c0_3, %c0_4] : memref<1x4xf32, #tpu.memory_space<vmem>>, vector<1x4xf32>
    %4 = vector.broadcast %3 : vector<1x4xf32> to vector<32x4xf32>
    %5 = arith.addf %2, %4 : vector<32x4xf32>
    %c0_5 = arith.constant 0 : index
    %c0_6 = arith.constant 0 : index
    %6 = vector.load %arg4[%c0_5, %c0_6] : memref<32x4xf32, #tpu.memory_space<vmem>>, vector<32x4xf32>
    %7 = arith.addf %5, %6 : vector<32x4xf32>
    %c0_7 = arith.constant 0 : index
    %c0_8 = arith.constant 0 : index
    %8 = vector.load %arg5[%c0_7, %c0_8] : memref<32x4xf32, #tpu.memory_space<vmem>>, vector<32x4xf32>
    tpu.vector_store %arg5[%c0_7, %c0_8], %7 {strides = array<i32>} : memref<32x4xf32, #tpu.memory_space<vmem>>, vector<32x4xf32>,
    return
  }
  func.func @transform_0(%arg0: i32) -> (i32, i32) {
    %c0_i32 = arith.constant 0 : i32
    %c0_i32_0 = arith.constant 0 : i32
    return %arg0, %c0_i32 : i32, i32
  }
  func.func @transform_1(%arg0: i32) -> (i32, i32) {
    %c0_i32 = arith.constant 0 : i32
    %c0_i32_0 = arith.constant 0 : i32
    %c0_i32_1 = arith.constant 0 : i32
    return %c0_i32, %c0_i32_0 : i32, i32
  }
  func.func @transform_2(%arg0: i32) -> (i32, i32) {
    %c0_i32 = arith.constant 0 : i32
    %c0_i32_0 = arith.constant 0 : i32
    %c0_i32_1 = arith.constant 0 : i32
    return %c0_i32, %c0_i32_0 : i32, i32
  }
  func.func @transform_3(%arg0: i32) -> (i32, i32) {
    %c0_i32 = arith.constant 0 : i32
    %c0_i32_0 = arith.constant 0 : i32
    return %arg0, %c0_i32 : i32, i32
  }
  func.func @transform_4(%arg0: i32) -> (i32, i32) {
    %c0_i32 = arith.constant 0 : i32
    %c0_i32_0 = arith.constant 0 : i32
    return %arg0, %c0_i32 : i32, i32
  }
}

module attributes {stable_mosaic.version = 11 : i64} {
  func.func @kernel(%arg0: i32, %arg1: memref<32x96xbf16, #tpu.memory_space<vmem>>, %arg2: memref<96x4xbf16, #tpu.memory_space<vmem>>, %arg3: memref<32x4xf32, #tpu.memory_space<vmem>>) attributes {dimension_semantics = [#tpu.dimension_semantics<parallel>], iteration_bounds = array<i64: 1>, scalar_prefetch = 0 : i64, scratch_operands = 0 : i64, tpu.core_type = #tpu.core_type<tc>, window_params = [{transform_indices = @transform_0, window_bounds = array<i64: 32, 96>}, {pipeline_mode = #tpu.pipeline_mode<synchronous>, transform_indices = @transform_1, window_bounds = array<i64: 96, 4>}, {transform_indices = @transform_2, window_bounds = array<i64: 32, 4>}]} {
    %c0 = arith.constant 0 : index
    %c0_0 = arith.constant 0 : index
    %0 = vector.load %arg1[%c0, %c0_0] : memref<32x96xbf16, #tpu.memory_space<vmem>>, vector<32x96xbf16>
    %c0_1 = arith.constant 0 : index
    %c0_2 = arith.constant 0 : index
    %1 = vector.load %arg2[%c0_1, %c0_2] : memref<96x4xbf16, #tpu.memory_space<vmem>>, vector<96x4xbf16>
    %cst = arith.constant dense<0.000000e+00> : vector<32x4xf32>
    %2 = tpu.matmul %0, %1, %cst {dimension_numbers = #tpu.dot_dimension_numbers<[1], [0], [0], [1], [0, 0, 1, 1], [], []>} : vector<32x96xbf16>, vector<96x4xbf16>, vector<32x4xf32> -> vector<32x4xf32>
    %c0_3 = arith.constant 0 : index
    %c0_4 = arith.constant 0 : index
    %3 = vector.load %arg3[%c0_3, %c0_4] : memref<32x4xf32, #tpu.memory_space<vmem>>, vector<32x4xf32>
    tpu.vector_store %arg3[%c0_3, %c0_4], %2 {strides = array<i32>} : memref<32x4xf32, #tpu.memory_space<vmem>>, vector<32x4xf32>,
    return
  }
  func.func @transform_0(%arg0: i32) -> (i32, i32) {
    %c0_i32 = arith.constant 0 : i32
    %c0_i32_0 = arith.constant 0 : i32
    return %arg0, %c0_i32 : i32, i32
  }
  func.func @transform_1(%arg0: i32) -> (i32, i32) {
    %c0_i32 = arith.constant 0 : i32
    %c0_i32_0 = arith.constant 0 : i32
    %c0_i32_1 = arith.constant 0 : i32
    return %c0_i32, %c0_i32_0 : i32, i32
  }
  func.func @transform_2(%arg0: i32) -> (i32, i32) {
    %c0_i32 = arith.constant 0 : i32
    %c0_i32_0 = arith.constant 0 : i32
    return %arg0, %c0_i32 : i32, i32
  }
}

</mosaic_0001>

<bundles_post_ra>
// kernel: _lambda_.21
= control target key start
LH: loop header
LB: loop body
LE: loop exit
PB: predicated region body
PF: predicated region fallthrough
CT: control target
= control target key end

     0   :  { %s436_s12 = smov 0   ;;  %s459_s0 = inlined_call_operand.vmem [shape: bf16[2,16,4], index: 0, kind: input, shape index: {}]   ;;  %s460_s1 = inlined_call_operand.vmem [shape: bf16[16,16], index: 1, kind: input, shape index: {}]   ;;  %s461_s2 = inlined_call_operand.vmem [shape: bf16[2,16,4], index: 2, kind: output, shape index: {0}]   ;;  %s462_s3 = inlined_call_operand.vmem [shape: bf16[2,16,4], index: 3, kind: output, shape index: {1}]  }
   0x1 LB: > { %s358_s13 = sadd.s32 4294967295, %s412_s12   ;;  %p362_p0 = scmp.ge.s32.totalorder %s412_s12, 1  ;;  %s412_s12 = sphi %s436_s12, %s14_s12  }
   0x2   : > { %p140_p1 = scmp.lt.s32.totalorder %s412_s12, 3 }
   0x4   : > { %p141_p2 = pnand %p362_p0, %p140_p1 }
   0x5   : > { %p169_p3 = scmp.lt.s32.totalorder (!%p141_p2), %s358_s13, 1  ;;  %v414_v0 = vmov (!%p141_p2), 0.0   ;;  %vm415_vm0 = vmmov (!%p141_p2), 0   ;;  %v404_v2 = vld [vmem:[%s460_s1] sm:$0xff] (!%p141_p2)   ;;  %vm202_vm1 = vcmask (!%p141_p2), 130048   ;;  %vm257_vm2 = vcmask (!%p141_p2), 27648  }
   0x6   : > { %144 = sbr.rel (%p141_p2) target bundleno = 239 (0xef), region = 28  ;;  %387 = vmatprep.subr.bf16.mxu0 (!%p141_p2), %v414_v0  ;;  %389 = vmatprep.mubr.msk.bf16.mxu0 (!%p141_p2), %vm415_vm0, %v414_v0 }
   0xd   : > { %s464_s13 = smov (!%p169_p3, %s358_s13), 1 }
   0xe   : > { %s378_s14 = sshll.u32 %s464_s13, 3 }
   0xf   : > { %s173_s17 = scalar_lea.vmem %s459_s0, %s378_s14  ;;  %s183_s22 = scalar_lea.vmem %s462_s3, %s378_s14 }
  0x10   : > { %v185_v1 = vld [vmem:[%s173_s17] sm:$0xff]   ;;  %s178_s25 = scalar_lea.vmem %s461_s2, %s378_s14 }
  0x11   : > { %388 = vmatpush3.bf16.msra.mxu0 %v185_v1  ;;  %v187_v3 = vunpack.c.l.bf16 %v185_v1  ;;  %v188_v4 = vunpack.c.h.bf16 %v185_v1 }
  0x14   : > { %390 = vmatmul.mubr.msk.bf16.vlgmr.msra.gmra.mrb[0].mxu0 %vm202_vm1, %v404_v2 }
  0xe7   : > { %v240_v5 = vpop.f32.mrb[0].mxu0 }
  0xe8   : > { %v247_v6 = vsub.f32 %v187_v3, %v240_v5  ;;  %v383_v7 = vpack.c.bf16 %v240_v5, %v240_v5  ;;  %v391_v8 = vpop.f32.mrb[1].mxu0 }
  0xe9   : > { %v243_v9 = vpop.f32.mrb[2].mxu0 }
  0xea   : > { %v381_v10 = vpack.c.bf16 %v247_v6, %v247_v6  ;;  %268 = vst.msk [vmem:[%s183_s22] sm:$0xf] %vm257_vm2, %v383_v7  ;;  %v248_v11 = vsub.f32 %v188_v4, %v243_v9  ;;  %v384_v12 = vpack.c.bf16 %v243_v9, %v243_v9  ;;  %v392_v13 = vpop.f32.mrb[3].mxu0 }
  0xec   : > { %258 = vst.msk [vmem:[%s178_s25] sm:$0xf] %vm257_vm2, %v381_v10  ;;  %v382_v14 = vpack.c.bf16 %v248_v11, %v248_v11  ;;  %269 = vst.msk [vmem:[%s183_s22 + $0x4] sm:$0xf] %vm257_vm2, %v384_v12 }
  0xee   : > { %259 = vst.msk [vmem:[%s178_s25 + $0x4] sm:$0xf] %vm257_vm2, %v382_v14 }
  0xef PF: > { %s14_s12 = sadd.s32 1, %s412_s12  }
  0xf0   : > { %p11_p4 = scmp.ge.s32.totalorder %s14_s12, 4  }
  0xf2   :  { %13 = sbr.rel (!%p11_p4) target bundleno = 1 (0x1), region = 70 }

// kernel: _lambda_.22
= control target key start
LH: loop header
LB: loop body
LE: loop exit
PB: predicated region body
PF: predicated region fallthrough
CT: control target
= control target key end

     0   :  { %vm40_vm0 = vcmask 1045504   ;;  %vm33_vm1 = vcmask 97280   ;;  %vm109_vm2 = vcmask 257024   ;;  %s180_s1 = inlined_call_operand.vmem [shape: bf16[12,32], index: 1, kind: input, shape index: {}]   ;;  %s181_s0 = inlined_call_operand.vmem [shape: bf16[32,12], index: 0, kind: input, shape index: {}]   ;;  %s182_s2 = inlined_call_operand.vmem [shape: bf16[32,32], index: 2, kind: output, shape index: {}]  }
   0x1   :  { %v141_v0 = vld [vmem:[%s180_s1] sm:$0x3f]   ;;  %v143_v3 = vld [vmem:[%s181_s0 + $0x8] sm:$0xff]  }
   0x2   :  { %v142_v1 = vld [vmem:[%s181_s0] sm:$0xff]   ;;  %140 = vmatprep.subr.msk.bf16.mxu0 %vm40_vm0, %v141_v0  ;;  %v42_v2 = vsel %vm40_vm0, %v141_v0, 0 }
   0x3   :  { %135 = vmatpush3.bf16.msra.mxu0 %v42_v2  ;;  %136 = vmatprep.mubr.msk.bf16.mxu0 %vm33_vm1, %v142_v1 }
   0x6   :  { %137 = vmatmul.mubr.msk.bf16.vlgmr.msra.gmra.mrb[0].mxu0 %vm33_vm1, %v143_v3 }
  0xd9   :  { %v138_v4 = vpop.f32.mrb[0].mxu0 }
  0xda   :  { %v129_v5 = vpack.c.bf16 %v138_v4, %v138_v4  ;;  %v78_v6 = vpop.f32.mrb[1].mxu0 }
  0xdb   :  { %v127_v7 = vpack.c.bf16 %v78_v6, %v78_v6  ;;  %v139_v8 = vpop.f32.mrb[2].mxu0 }
  0xdc   :  { %112 = vst.msk [vmem:[%s182_s2 + $0x8] sm:$0xf] %vm109_vm2, %v129_v5  ;;  %v130_v9 = vpack.c.bf16 %v139_v8, %v139_v8  ;;  %v81_v10 = vpop.f32.mrb[3].mxu0 }
  0xdd   :  { %110 = vst.msk [vmem:[%s182_s2] sm:$0xf] %vm109_vm2, %v127_v7  ;;  %v128_v11 = vpack.c.bf16 %v81_v10, %v81_v10 }
  0xde   :  { %113 = vst.msk [vmem:[%s182_s2 + $0xc] sm:$0xf] %vm109_vm2, %v130_v9 }
  0xdf   :  { %111 = vst.msk [vmem:[%s182_s2 + $0x4] sm:$0xf] %vm109_vm2, %v128_v11 }

// kernel: _lambda_.23
= control target key start
LH: loop header
LB: loop body
LE: loop exit
PB: predicated region body
PF: predicated region fallthrough
CT: control target
= control target key end

     0   :  { %vm52_vm0 = vcmask 261120   ;;  %vm124_vm1 = vcmask 781312   ;;  %s211_s1 = inlined_call_operand.vmem [shape: bf16[32,96], index: 1, kind: input, shape index: {}]   ;;  %s212_s0 = inlined_call_operand.vmem [shape: bf16[32,32], index: 0, kind: input, shape index: {}]   ;;  %s213_s2 = inlined_call_operand.vmem [shape: f32[1,96], index: 2, kind: input, shape index: {}]   ;;  %s214_s3 = inlined_call_operand.vmem [shape: bf16[32,96], index: 3, kind: output, shape index: {}]  }
   0x1   :  { %v160_v0 = vld [vmem:[%s211_s1] sm:$0xff]   ;;  %v161_v1 = vld [vmem:[%s211_s1 + $0x8] sm:$0xff]  }
   0x2   :  { %152 = vmatprep.subr.bf16.mxu0 %v160_v0  ;;  %v162_v2 = vld [vmem:[%s212_s0] sm:$0xff]   ;;  %v163_v3 = vld [vmem:[%s212_s0 + $0x8] sm:$0xff]  }
   0x3   :  { %153 = vmatpush3.bf16.msra.mxu0 %v160_v0  ;;  %156 = vmatprep.mubr.msk.bf16.mxu0 %vm52_vm0, %v162_v2  ;;  %v133_v4 = vld [vmem:[%s213_s2] ss:$0 sm:$0xff] }
   0x4   :  { %154 = vmatprep.subr.bf16.mxu0 %v161_v1 }
   0x7   :  { %155 = vmatpush3.bf16.msra.mxu0 %v161_v1 }
   0xa   :  { %157 = vmatmul.mubr.msk.bf16.vlgmr.msra.gmra.mrb[0].mxu0 %vm52_vm0, %v163_v3 }
  0xdd   :  { %v158_v5 = vpop.f32.mrb[0].mxu0 }
  0xde   :  { %v102_v6 = vadd.f32 %v158_v5, %v133_v4  ;;  %v93_v7 = vpop.f32.mrb[1].mxu0 }
  0xdf   :  { %v94_v8 = vadd.f32 %v133_v4, %v93_v7  ;;  %v159_v9 = vpop.f32.mrb[2].mxu0 }
  0xe0   :  { %v146_v10 = vpack.c.bf16 %v102_v6, %v102_v6  ;;  %v105_v11 = vadd.f32 %v159_v9, %v133_v4  ;;  %v96_v12 = vpop.f32.mrb[3].mxu0 }
  0xe1   :  { %v144_v13 = vpack.c.bf16 %v94_v8, %v94_v8  ;;  %v97_v14 = vadd.f32 %v133_v4, %v96_v12 }
  0xe2   :  { %127 = vst.msk [vmem:[%s214_s3 + $0x8] sm:$0xf] %vm124_vm1, %v146_v10  ;;  %v147_v15 = vpack.c.bf16 %v105_v11, %v105_v11 }
  0xe3   :  { %125 = vst.msk [vmem:[%s214_s3] sm:$0xf] %vm124_vm1, %v144_v13  ;;  %v145_v16 = vpack.c.bf16 %v97_v14, %v97_v14 }
  0xe4   :  { %128 = vst.msk [vmem:[%s214_s3 + $0xc] sm:$0xf] %vm124_vm1, %v147_v15 }
  0xe5   :  { %126 = vst.msk [vmem:[%s214_s3 + $0x4] sm:$0xf] %vm124_vm1, %v145_v16 }

// kernel: reverse.7
= control target key start
LH: loop header
LB: loop body
LE: loop exit
PB: predicated region body
PF: predicated region fallthrough
CT: control target
= control target key end

     0   :  { %v2_v0 = vlaneseq  ;;  %s238_s0 = inlined_call_operand.vmem [shape: f32[2,4,8,7], index: 0, kind: input, shape index: {}]   ;;  %s239_s1 = inlined_call_operand.vmem [shape: f32[2,4,8,7], index: 1, kind: output, shape index: {}]  }
   0x1   :  { %v50_v2 = vld [vmem:[%s238_s0 + $0x10] sm:$0xff]  ;;  %v46_v3 = vld [vmem:[%s238_s0] sm:$0xff]  ;;  %v52_v4 = vld [vmem:[%s238_s0 + $0x18] sm:$0xff] }
   0x2   :  { %v3_v1 = vsub.s32 6, %v2_v0  ;;  %v48_v5 = vld [vmem:[%s238_s0 + $0x8] sm:$0xff]  ;;  %v54_v7 = vld [vmem:[%s238_s0 + $0x20] sm:$0xff]  ;;  %v60_v8 = vld [vmem:[%s238_s0 + $0x38] sm:$0xff] }
   0x3   :  { %v56_v6 = vld [vmem:[%s238_s0 + $0x28] sm:$0xff]  ;;  %v58_v9 = vld [vmem:[%s238_s0 + $0x30] sm:$0xff] }
   0x4   :  { %4 = vset.pattern.permute.xlu0 %v3_v1  ;;  %179 = vset.pattern.permute.xlu1 %v3_v1 }
   0x5   :  { %78 = vperm.xlu1 %179, %v50_v2   ;;  %66 = vperm.xlu0 %4, %v46_v3  }
   0x9   :  { %84 = vperm.xlu1 %179, %v52_v4   ;;  %72 = vperm.xlu0 %4, %v48_v5  }
   0xd   :  { %96 = vperm.xlu1 %179, %v56_v6   ;;  %90 = vperm.xlu0 %4, %v54_v7  }
  0x11   :  { %108 = vperm.xlu1 %179, %v60_v8   ;;  %102 = vperm.xlu0 %4, %v58_v9  }
  0x84   :  { %v79_v10 = vpop.permute.xlu1 %78  ;;  %v67_v11 = vpop.permute.xlu0 %66 }
  0x85   :  { %157 = vst [vmem:[%s239_s1 + $0x10] sm:$0xff] %v79_v10  ;;  %153 = vst [vmem:[%s239_s1] sm:$0xff] %v67_v11 }
  0x88   :  { %v85_v12 = vpop.permute.xlu1 %84  ;;  %v73_v13 = vpop.permute.xlu0 %72 }
  0x89   :  { %159 = vst [vmem:[%s239_s1 + $0x18] sm:$0xff] %v85_v12  ;;  %155 = vst [vmem:[%s239_s1 + $0x8] sm:$0xff] %v73_v13 }
  0x8c   :  { %v97_v14 = vpop.permute.xlu1 %96  ;;  %v91_v15 = vpop.permute.xlu0 %90 }
  0x8d   :  { %163 = vst [vmem:[%s239_s1 + $0x28] sm:$0xff] %v97_v14  ;;  %161 = vst [vmem:[%s239_s1 + $0x20] sm:$0xff] %v91_v15 }
  0x90   :  { %v109_v16 = vpop.permute.xlu1 %108  ;;  %v103_v17 = vpop.permute.xlu0 %102 }
  0x91   :  { %167 = vst [vmem:[%s239_s1 + $0x38] sm:$0xff] %v109_v16  ;;  %165 = vst [vmem:[%s239_s1 + $0x30] sm:$0xff] %v103_v17 }

// kernel: _lambda_.26
= control target key start
LH: loop header
LB: loop body
LE: loop exit
PB: predicated region body
PF: predicated region fallthrough
CT: control target
= control target key end

     0   :  { %vm52_vm0 = vcmask 261120   ;;  %vm124_vm1 = vcmask 257024   ;;  %s211_s1 = inlined_call_operand.vmem [shape: bf16[32,32], index: 1, kind: input, shape index: {}]   ;;  %s212_s0 = inlined_call_operand.vmem [shape: bf16[32,32], index: 0, kind: input, shape index: {}]   ;;  %s213_s2 = inlined_call_operand.vmem [shape: f32[1,32], index: 2, kind: input, shape index: {}]   ;;  %s214_s3 = inlined_call_operand.vmem [shape: bf16[32,32], index: 3, kind: output, shape index: {}]  }
   0x1   :  { %v160_v0 = vld [vmem:[%s211_s1] sm:$0xff]   ;;  %v161_v1 = vld [vmem:[%s211_s1 + $0x8] sm:$0xff]  }
   0x2   :  { %152 = vmatprep.subr.bf16.mxu0 %v160_v0  ;;  %v162_v2 = vld [vmem:[%s212_s0] sm:$0xff]   ;;  %v163_v3 = vld [vmem:[%s212_s0 + $0x8] sm:$0xff]  }
   0x3   :  { %153 = vmatpush3.bf16.msra.mxu0 %v160_v0  ;;  %156 = vmatprep.mubr.msk.bf16.mxu0 %vm52_vm0, %v162_v2  ;;  %v133_v4 = vld [vmem:[%s213_s2] ss:$0 sm:$0xff] }
   0x4   :  { %154 = vmatprep.subr.bf16.mxu0 %v161_v1 }
   0x7   :  { %155 = vmatpush3.bf16.msra.mxu0 %v161_v1 }
   0xa   :  { %157 = vmatmul.mubr.msk.bf16.vlgmr.msra.gmra.mrb[0].mxu0 %vm52_vm0, %v163_v3 }
  0xdd   :  { %v158_v5 = vpop.f32.mrb[0].mxu0 }
  0xde   :  { %v102_v6 = vadd.f32 %v158_v5, %v133_v4  ;;  %v93_v7 = vpop.f32.mrb[1].mxu0 }
  0xdf   :  { %v94_v8 = vadd.f32 %v133_v4, %v93_v7  ;;  %v159_v9 = vpop.f32.mrb[2].mxu0 }
  0xe0   :  { %v146_v10 = vpack.c.bf16 %v102_v6, %v102_v6  ;;  %v105_v11 = vadd.f32 %v159_v9, %v133_v4  ;;  %v96_v12 = vpop.f32.mrb[3].mxu0 }
  0xe1   :  { %v144_v13 = vpack.c.bf16 %v94_v8, %v94_v8  ;;  %v97_v14 = vadd.f32 %v133_v4, %v96_v12 }
  0xe2   :  { %127 = vst.msk [vmem:[%s214_s3 + $0x8] sm:$0xf] %vm124_vm1, %v146_v10  ;;  %v147_v15 = vpack.c.bf16 %v105_v11, %v105_v11 }
  0xe3   :  { %125 = vst.msk [vmem:[%s214_s3] sm:$0xf] %vm124_vm1, %v144_v13  ;;  %v145_v16 = vpack.c.bf16 %v97_v14, %v97_v14 }
  0xe4   :  { %128 = vst.msk [vmem:[%s214_s3 + $0xc] sm:$0xf] %vm124_vm1, %v147_v15 }
  0xe5   :  { %126 = vst.msk [vmem:[%s214_s3 + $0x4] sm:$0xf] %vm124_vm1, %v145_v16 }

// kernel: _lambda_.24
= control target key start
LH: loop header
LB: loop body
LE: loop exit
PB: predicated region body
PF: predicated region fallthrough
CT: control target
= control target key end

     0   :  { %10 = vsyncpa [#allocation5], 0  ;;  %s692_s0 = inlined_call_operand.vmem [shape: s32[2,2], index: 0, kind: input, shape index: {}]   ;;  %s693_s1 = inlined_call_operand.vmem [shape: f32[2,2], index: 1, kind: input, shape index: {}]   ;;  %s694_s2 = inlined_call_operand.vmem [shape: bf16[2,16,32], index: 2, kind: input, shape index: {}]   ;;  %s695_s3 = inlined_call_operand.vmem [shape: bf16[32,32], index: 3, kind: input, shape index: {}]   ;;  %s696_s4 = inlined_call_operand.vmem [shape: f32[1,32], index: 4, kind: input, shape index: {}]   ;;  %s697_s5 = inlined_call_operand.vmem [shape: bf16[2,16,32], index: 5, kind: output, shape index: {}]  }
   0x1   :  { %11 = vsyncpa [#allocation7], 0  ;;  %s608_s18 = smov 0  }
   0x2 LB: > { %s614_s19 = sadd.s32 4294967295, %s572_s18   ;;  %p456_p0 = scmp.ge.s32.totalorder %s572_s18, 1  ;;  %s572_s18 = sphi %s608_s18, %s17_s18  }
   0x3   : > { %p158_p1 = scmp.lt.s32.totalorder %s572_s18, 3  ;;  %s171_s22 = sshll.u32 %s692_s0, 4  ;;  %s172_s22 = int_to_ptr.vmem [resolvable:$true] %s171_s22 }
   0x4   : > { %p698_p3 = scmp.eq.s32.totalorder %s614_s19, 0  ;;  %s182_s26 = sshll.u32 %s693_s1, 4  ;;  %s183_s26 = int_to_ptr.vmem [resolvable:$true] %s182_s26 }
   0x5   : > { %p621_p2 = pnand %p456_p0, %p158_p1  ;;  %s528_s28 = scalar_lea.vmem %s172_s22, 32 }
   0x6   : > { %p529_p6 = scmp.ne.s32.totalorder %s172_s22, %s528_s28  ;;  %p536_p10 = scmp.lt.s32.totalorder %s172_s22, %s172_s22 }
   0x7   : > { %s700_s23 = scalar_select %p621_p2, 1, 0 }
   0x8   : > { %p503_p4 = pneg %p621_p2  ;;  %p537_p11 = scmp.lt.s32.totalorder %s528_s28, %s528_s28 }
   0xa   : > { %p633_p5 = pnand %p698_p3, %p503_p4  ;;  %p538_p12 = por %p537_p11, %p536_p10 }
   0xc   : > { %p530_p7 = pneg %p633_p5 }
   0xe   : > { %p531_p8 = pnand %p530_p7, %p529_p6 }
  0x10   : > { %p532_p9 = pneg %p531_p8 }
  0x12   : > { %p539_p13 = pnand %p538_p12, %p532_p9 }
  0x14   : > { %542 = shalt.err (!%p539_p13)
}
  0x15   : > { %s574_s29 = smov [#allocation4]   ;;  %s543_s30 = scalar_lea.vmem %s183_s26, 32 }
  0x16   : > { %506 = dma.vmem_to_smem (!%p633_p5), %s172_s22, 32, %s574_s29, [#allocation5]  }
  0x17   : > { %p544_p0 = scmp.ne.s32.totalorder %s183_s26, %s543_s30  ;;  %p551_p3 = scmp.lt.s32.totalorder %s183_s26, %s183_s26 }
  0x18   : > { %p552_p2 = scmp.lt.s32.totalorder %s543_s30, %s543_s30 }
  0x19   : > { %p546_p1 = pnand %p544_p0, %p530_p7 }
  0x1a   : > { %p553_p6 = por %p552_p2, %p551_p3 }
  0x1b   : > { %p547_p4 = pneg %p546_p1 }
  0x1d   : > { %p554_p8 = pnand %p553_p6, %p547_p4 }
  0x1f   : > { %557 = shalt.err (!%p554_p8)
}
  0x20   : > { %s575_s6 = smov [#allocation6]   ;;  %p702_p9 = scmp.ne.s32.totalorder %s700_s23, 0 }
  0x21   : > { %509 = dma.vmem_to_smem (!%p633_p5), %s183_s26, 32, %s575_s6, [#allocation7]  }
  0x22   : > { %209 = sbr.rel (%p702_p9) target bundleno = 308 (0x134), region = 40  ;;  %p703_p10 = scmp.eq.s32.totalorder (!%p702_p9), %s614_s19, 0 }
  0x29   : > { %563 = dma.done.wait (%p703_p10), [#allocation5], 32   ;;  %p704_p11 = pmov %p703_p10 }
  0x2a   : > { %p705_p7 = pmov %p703_p10 }
  0x2b   : > { %565 = vsyncadd (%p704_p11), [#allocation5], 4294967264 }
  0x2c   : > { %567 = dma.done.wait (%p705_p7), [#allocation7], 32   ;;  %p706_p2 = pmov %p705_p7 }
  0x2e   : > { %569 = vsyncadd (%p706_p2), [#allocation7], 4294967264 }
  0x2f   : > { %219 = sfence }
  0x30   : > { %p242_p3 = scmp.lt.s32.totalorder %s614_s19, 1  ;;  %vm257_vm0 = vcmask 261120   ;;  %v576_v0 = vmov 0.0   ;;  %s467_s7 = sshll.u32 %s614_s19, 7  ;;  %v526_v1 = vld [vmem:[%s695_s3] sm:$0xff]   ;;  %v527_v2 = vld [vmem:[%s695_s3 + $0x8] sm:$0xff]  }
  0x31   : > { %262 = vst.msk [vmem:[#allocation3] sm:$0xff] %vm257_vm0, %v576_v0  ;;  %263 = vst.msk [vmem:[#allocation3 + $0x8] sm:$0xff] %vm257_vm0, %v576_v0  ;;  %487 = vmatprep.subr.bf16.mxu0 %v576_v0  ;;  %vm577_vm1 = vmmov 0   ;;  %s265_s16 = sld [smem:[#allocation4 + %s467_s7]]  ;;  %s279_s20 = sadd.s32 1, %s467_s7  ;;  %vm372_vm2 = vcmask 257024  }
  0x32   : > { %s708_s19 = smov (!%p242_p3, %s614_s19), 1  ;;  %488 = vmatpush3.bf16.msra.mxu0 %v526_v1  ;;  %491 = vmatprep.mubr.msk.bf16.mxu0 %vm577_vm1, %v576_v0  ;;  %s266_s17 = sld [smem:[#allocation6 + %s467_s7]]  ;;  %v468_v27 = vld [vmem:[%s696_s4] ss:$0 sm:$0xff] }
  0x33   : > { %s476_s12 = sshll.u32 %s708_s19, 3  ;;  %489 = vmatprep.subr.bf16.mxu0 %v576_v0  ;;  %s280_s21 = sld [smem:[#allocation4 + %s279_s20]] }
  0x34   : > { %s246_s15 = scalar_lea.vmem %s694_s2, %s476_s12  ;;  %s281_s22 = sld [smem:[#allocation6 + %s279_s20]] }
  0x35   : > { %v481_v3 = vld [vmem:[%s246_s15] sm:$0xff]   ;;  %s251_s29 = scalar_lea.vmem %s697_s5, %s476_s12 }
  0x36   : > { %v482_v4 = vunpack.c.l.bf16 %v481_v3  ;;  %v483_v5 = vunpack.c.h.bf16 %v481_v3  ;;  %490 = vmatpush3.bf16.msra.mxu0 %v527_v2 }
  0x37   : > { %s267_s23 = scalar_lea.vmem [#allocation2], %s265_s16 }
  0x38   : > { %258 = vst.msk [vmem:[#allocation2] sm:$0xff] %vm257_vm0, %v482_v4  ;;  %259 = vst.msk [vmem:[#allocation2 + $0x8] sm:$0xff] %vm257_vm0, %v483_v5  ;;  %v272_v6 = vstv %s266_s17  ;;  %v270_v7 = vld [vmem:[#allocation3] sm:$0xff]  ;;  %v271_v10 = vld [vmem:[#allocation3 + $0x8] sm:$0xff] }
  0x39   : > { %260 = vst.msk [vmem:[#allocation2 + $0x10] sm:$0xff] %vm257_vm0, %v482_v4  ;;  %261 = vst.msk [vmem:[#allocation2 + $0x18] sm:$0xff] %vm257_vm0, %v483_v5  ;;  %s282_s24 = scalar_lea.vmem [#allocation2], %s280_s21 }
  0x3a   : > { %v287_v17 = vstv %s281_s22 }
  0x40   : > { %v268_v8 = vld [vmem:[%s267_s23] sm:$0xff]  ;;  %v269_v9 = vld [vmem:[%s267_s23 + $0x8] sm:$0xff] }
  0x41   : > { %v273_v11 = vmul.f32 %v272_v6, %v268_v8  ;;  %v274_v12 = vmul.f32 %v272_v6, %v269_v9  ;;  %v283_v15 = vld [vmem:[%s282_s24] sm:$0xff]  ;;  %v284_v16 = vld [vmem:[%s282_s24 + $0x8] sm:$0xff] }
  0x42   : > { %v288_v18 = vmul.f32 %v287_v17, %v283_v15  ;;  %v289_v19 = vmul.f32 %v287_v17, %v284_v16 }
  0x43   : > { %v275_v13 = vadd.f32 %v273_v11, %v270_v7  ;;  %v276_v14 = vadd.f32 %v274_v12, %v271_v10 }
  0x45   : > { %277 = vst.msk [vmem:[#allocation3] sm:$0xff] %vm257_vm0, %v275_v13  ;;  %278 = vst.msk [vmem:[#allocation3 + $0x8] sm:$0xff] %vm257_vm0, %v276_v14 }
  0x4c   : > { %v285_v20 = vld [vmem:[#allocation3] sm:$0xff]  ;;  %v286_v21 = vld [vmem:[#allocation3 + $0x8] sm:$0xff] }
  0x4d   : > { %v290_v22 = vadd.f32 %v288_v18, %v285_v20  ;;  %v291_v23 = vadd.f32 %v289_v19, %v286_v21 }
  0x4f   : > { %292 = vst.msk [vmem:[#allocation3] sm:$0xff] %vm257_vm0, %v290_v22  ;;  %293 = vst.msk [vmem:[#allocation3 + $0x8] sm:$0xff] %vm257_vm0, %v291_v23 }
  0x56   : > { %v294_v24 = vld [vmem:[#allocation3] sm:$0xff]  ;;  %v295_v25 = vld [vmem:[#allocation3 + $0x8] sm:$0xff] }
  0x57   : > { %v300_v26 = vpack.c.bf16 %v295_v25, %v294_v24 }
  0x59   : > { %492 = vmatmul.mubr.msk.bf16.vlgmr.msra.gmra.mrb[0].mxu0 %vm257_vm0, %v300_v26 }
 0x12c   : > { %v357_v28 = vpop.f32.mrb[0].mxu0 }
 0x12d   : > { %v358_v29 = vadd.f32 %v468_v27, %v357_v28  ;;  %v493_v30 = vpop.f32.mrb[1].mxu0 }
 0x12e   : > { %v360_v31 = vpop.f32.mrb[2].mxu0 }
 0x12f   : > { %v478_v32 = vpack.c.bf16 %v358_v29, %v358_v29  ;;  %v361_v33 = vadd.f32 %v468_v27, %v360_v31  ;;  %v494_v34 = vpop.f32.mrb[3].mxu0 }
 0x131   : > { %373 = vst.msk [vmem:[%s251_s29] sm:$0xf] %vm372_vm2, %v478_v32  ;;  %v479_v35 = vpack.c.bf16 %v361_v33, %v361_v33 }
 0x133   : > { %374 = vst.msk [vmem:[%s251_s29 + $0x4] sm:$0xf] %vm372_vm2, %v479_v35 }
 0x134 PF: > { %s17_s18 = sadd.s32 1, %s572_s18  }
 0x135   : > { %p14_p5 = scmp.ge.s32.totalorder %s17_s18, 4  }
 0x137   :  { %16 = sbr.rel (!%p14_p5) target bundleno = 2 (0x2), region = 81 }
 0x13e   :  { %396 = vsyncpa [#allocation5], 1 }
 0x13f   :  { %398 = vsyncpa [#allocation5 + $0x1], 1 }
 0x140   :  { %399 = vsyncpa [#allocation7], 1 }

// kernel: _lambda_.25
= control target key start
LH: loop header
LB: loop body
LE: loop exit
PB: predicated region body
PF: predicated region fallthrough
CT: control target
= control target key end

     0   :  { %s509_s15 = smov 0   ;;  %s535_s0 = inlined_call_operand.vmem [shape: bf16[2,16,32], index: 0, kind: input, shape index: {}]   ;;  %s536_s1 = inlined_call_operand.vmem [shape: bf16[2,16,32], index: 1, kind: input, shape index: {}]   ;;  %s537_s2 = inlined_call_operand.vmem [shape: bf16[16,16], index: 2, kind: input, shape index: {}]   ;;  %s538_s3 = inlined_call_operand.vmem [shape: bf16[2,16,32], index: 3, kind: output, shape index: {0}]   ;;  %s539_s4 = inlined_call_operand.vmem [shape: bf16[2,16,32], index: 4, kind: output, shape index: {1}]  }
   0x1 LB: > { %s418_s16 = sadd.s32 4294967295, %s480_s15   ;;  %p422_p0 = scmp.ge.s32.totalorder %s480_s15, 1  ;;  %s480_s15 = sphi %s509_s15, %s15_s15  }
   0x2   : > { %p175_p1 = scmp.lt.s32.totalorder %s480_s15, 3 }
   0x4   : > { %p176_p2 = pnand %p422_p0, %p175_p1 }
   0x5   : > { %p211_p3 = scmp.lt.s32.totalorder (!%p176_p2), %s418_s16, 1  ;;  %v482_v0 = vmov (!%p176_p2), 0.0   ;;  %vm483_vm0 = vmmov (!%p176_p2), 0   ;;  %v473_v10 = vld [vmem:[%s537_s2] sm:$0xff] (!%p176_p2)   ;;  %vm250_vm1 = vcmask (!%p176_p2), 130048   ;;  %vm305_vm2 = vcmask (!%p176_p2), 257024  }
   0x6   : > { %179 = sbr.rel (%p176_p2) target bundleno = 246 (0xf6), region = 32  ;;  %457 = vmatprep.subr.bf16.mxu0 (!%p176_p2), %v482_v0  ;;  %459 = vmatprep.mubr.msk.bf16.mxu0 (!%p176_p2), %vm483_vm0, %v482_v0 }
   0xd   : > { %s541_s16 = smov (!%p211_p3, %s418_s16), 1 }
   0xe   : > { %s439_s17 = sshll.u32 %s541_s16, 3 }
   0xf   : > { %s215_s20 = scalar_lea.vmem %s535_s0, %s439_s17  ;;  %s220_s23 = scalar_lea.vmem %s536_s1, %s439_s17 }
  0x10   : > { %v448_v1 = vld [vmem:[%s215_s20] sm:$0xff]   ;;  %s230_s28 = scalar_lea.vmem %s539_s4, %s439_s17  ;;  %s225_s5 = scalar_lea.vmem %s538_s3, %s439_s17 }
  0x11   : > { %v452_v2 = vld [vmem:[%s220_s23] sm:$0xff]   ;;  %v449_v3 = vunpack.c.l.bf16 %v448_v1  ;;  %v450_v4 = vunpack.c.h.bf16 %v448_v1 }
  0x12   : > { %v453_v5 = vunpack.c.l.bf16 %v452_v2  ;;  %v454_v6 = vunpack.c.h.bf16 %v452_v2 }
  0x14   : > { %v240_v7 = vadd.f32 %v453_v5, %v449_v3  ;;  %v241_v8 = vadd.f32 %v454_v6, %v450_v4 }
  0x16   : > { %v244_v9 = vpack.c.bf16 %v241_v8, %v240_v7 }
  0x18   : > { %458 = vmatpush3.bf16.msra.mxu0 %v244_v9 }
  0x1b   : > { %460 = vmatmul.mubr.msk.bf16.vlgmr.msra.gmra.mrb[0].mxu0 %vm250_vm1, %v473_v10 }
  0xee   : > { %v288_v11 = vpop.f32.mrb[0].mxu0 }
  0xef   : > { %v295_v12 = vsub.f32 %v240_v7, %v288_v11  ;;  %v445_v13 = vpack.c.bf16 %v288_v11, %v288_v11  ;;  %v461_v14 = vpop.f32.mrb[1].mxu0 }
  0xf0   : > { %v291_v15 = vpop.f32.mrb[2].mxu0 }
  0xf1   : > { %v443_v16 = vpack.c.bf16 %v295_v12, %v295_v12  ;;  %316 = vst.msk [vmem:[%s230_s28] sm:$0xf] %vm305_vm2, %v445_v13  ;;  %v296_v17 = vsub.f32 %v241_v8, %v291_v15  ;;  %v446_v18 = vpack.c.bf16 %v291_v15, %v291_v15  ;;  %v462_v19 = vpop.f32.mrb[3].mxu0 }
  0xf3   : > { %306 = vst.msk [vmem:[%s225_s5] sm:$0xf] %vm305_vm2, %v443_v16  ;;  %v444_v20 = vpack.c.bf16 %v296_v17, %v296_v17  ;;  %317 = vst.msk [vmem:[%s230_s28 + $0x4] sm:$0xf] %vm305_vm2, %v446_v18 }
  0xf5   : > { %307 = vst.msk [vmem:[%s225_s5 + $0x4] sm:$0xf] %vm305_vm2, %v444_v20 }
  0xf6 PF: > { %s15_s15 = sadd.s32 1, %s480_s15  }
  0xf7   : > { %p12_p4 = scmp.ge.s32.totalorder %s15_s15, 4  }
  0xf9   :  { %14 = sbr.rel (!%p12_p4) target bundleno = 1 (0x1), region = 77 }

// kernel: _lambda_.30
= control target key start
LH: loop header
LB: loop body
LE: loop exit
PB: predicated region body
PF: predicated region fallthrough
CT: control target
= control target key end

     0   :  { %s414_s12 = smov 0   ;;  %s437_s0 = inlined_call_operand.vmem [shape: bf16[2,16,32], index: 0, kind: input, shape index: {}]   ;;  %s438_s1 = inlined_call_operand.vmem [shape: bf16[2,16,32], index: 1, kind: input, shape index: {}]   ;;  %s439_s2 = inlined_call_operand.vmem [shape: bf16[16,16], index: 2, kind: input, shape index: {}]   ;;  %s440_s3 = inlined_call_operand.vmem [shape: bf16[2,16,32], index: 3, kind: output, shape index: {}]  }
   0x1 LB: > { %s335_s13 = sadd.s32 4294967295, %s390_s12   ;;  %p339_p0 = scmp.ge.s32.totalorder %s390_s12, 1  ;;  %s390_s12 = sphi %s414_s12, %s13_s12  }
   0x2   : > { %p147_p1 = scmp.lt.s32.totalorder %s390_s12, 3 }
   0x4   : > { %p148_p2 = pnand %p339_p0, %p147_p1 }
   0x5   : > { %p176_p3 = scmp.lt.s32.totalorder (!%p148_p2), %s335_s13, 1  ;;  %v392_v0 = vmov (!%p148_p2), 0.0   ;;  %vm393_vm0 = vmmov (!%p148_p2), 0   ;;  %v383_v10 = vld [vmem:[%s439_s2] sm:$0xff] (!%p148_p2)   ;;  %vm210_vm1 = vcmask (!%p148_p2), 130048   ;;  %vm265_vm2 = vcmask (!%p148_p2), 257024  }
   0x6   : > { %151 = sbr.rel (%p148_p2) target bundleno = 246 (0xf6), region = 32  ;;  %367 = vmatprep.subr.bf16.mxu0 (!%p148_p2), %v392_v0  ;;  %369 = vmatprep.mubr.msk.bf16.mxu0 (!%p148_p2), %vm393_vm0, %v392_v0 }
   0xd   : > { %s442_s13 = smov (!%p176_p3, %s335_s13), 1 }
   0xe   : > { %s352_s14 = sshll.u32 %s442_s13, 3 }
   0xf   : > { %s180_s17 = scalar_lea.vmem %s437_s0, %s352_s14  ;;  %s185_s20 = scalar_lea.vmem %s438_s1, %s352_s14 }
  0x10   : > { %v358_v1 = vld [vmem:[%s180_s17] sm:$0xff]   ;;  %s190_s25 = scalar_lea.vmem %s440_s3, %s352_s14 }
  0x11   : > { %v362_v2 = vld [vmem:[%s185_s20] sm:$0xff]   ;;  %v359_v3 = vunpack.c.l.bf16 %v358_v1  ;;  %v360_v4 = vunpack.c.h.bf16 %v358_v1 }
  0x12   : > { %v363_v5 = vunpack.c.l.bf16 %v362_v2  ;;  %v364_v6 = vunpack.c.h.bf16 %v362_v2 }
  0x14   : > { %v200_v7 = vadd.f32 %v363_v5, %v359_v3  ;;  %v201_v8 = vadd.f32 %v364_v6, %v360_v4 }
  0x16   : > { %v204_v9 = vpack.c.bf16 %v201_v8, %v200_v7 }
  0x18   : > { %368 = vmatpush3.bf16.msra.mxu0 %v204_v9 }
  0x1b   : > { %370 = vmatmul.mubr.msk.bf16.vlgmr.msra.gmra.mrb[0].mxu0 %vm210_vm1, %v383_v10 }
  0xee   : > { %v248_v11 = vpop.f32.mrb[0].mxu0 }
  0xef   : > { %v255_v12 = vsub.f32 %v200_v7, %v248_v11  ;;  %v371_v13 = vpop.f32.mrb[1].mxu0 }
  0xf0   : > { %v251_v14 = vpop.f32.mrb[2].mxu0 }
  0xf1   : > { %v355_v15 = vpack.c.bf16 %v255_v12, %v255_v12  ;;  %v256_v16 = vsub.f32 %v201_v8, %v251_v14  ;;  %v372_v17 = vpop.f32.mrb[3].mxu0 }
  0xf3   : > { %266 = vst.msk [vmem:[%s190_s25] sm:$0xf] %vm265_vm2, %v355_v15  ;;  %v356_v18 = vpack.c.bf16 %v256_v16, %v256_v16 }
  0xf5   : > { %267 = vst.msk [vmem:[%s190_s25 + $0x4] sm:$0xf] %vm265_vm2, %v356_v18 }
  0xf6 PF: > { %s13_s12 = sadd.s32 1, %s390_s12  }
  0xf7   : > { %p10_p4 = scmp.ge.s32.totalorder %s13_s12, 4  }
  0xf9   :  { %12 = sbr.rel (!%p10_p4) target bundleno = 1 (0x1), region = 65 }

// kernel: _lambda_.31
= control target key start
LH: loop header
LB: loop body
LE: loop exit
PB: predicated region body
PF: predicated region fallthrough
CT: control target
= control target key end

     0   :  { %vm45_vm0 = vcmask 261120   ;;  %vm139_vm1 = vcmask 523264   ;;  %vm219_vm2 = vcmask 257024   ;;  %s344_s1 = inlined_call_operand.vmem [shape: bf16[32,64], index: 1, kind: input, shape index: {}]   ;;  %s345_s0 = inlined_call_operand.vmem [shape: bf16[32,32], index: 0, kind: input, shape index: {}]   ;;  %s346_s2 = inlined_call_operand.vmem [shape: bf16[64,32], index: 2, kind: input, shape index: {}]   ;;  %s347_s3 = inlined_call_operand.vmem [shape: bf16[32,32], index: 3, kind: output, shape index: {}]  }
   0x1   :  { %v278_v0 = vld [vmem:[%s344_s1] sm:$0xff]   ;;  %v279_v1 = vld [vmem:[%s344_s1 + $0x8] sm:$0xff]   ;;  %v284_v6 = vld [vmem:[%s346_s2 + $0x10] sm:$0xff]  }
   0x2   :  { %258 = vmatprep.subr.bf16.mxu0 %v278_v0  ;;  %v15_v2 = vld [vmem:[%s345_s0] sm:$0xff]   ;;  %v17_v3 = vld [vmem:[%s345_s0 + $0x8] sm:$0xff]   ;;  %v285_v7 = vld [vmem:[%s346_s2 + $0x18] sm:$0xff]  }
   0x3   :  { %259 = vmatpush3.bf16.msra.mxu0 %v278_v0  ;;  %v282_v4 = vld [vmem:[%s346_s2] sm:$0xff]   ;;  %v283_v5 = vld [vmem:[%s346_s2 + $0x8] sm:$0xff]   ;;  %262 = vmatprep.mubr.msk.bf16.mxu0 %vm45_vm0, %v15_v2  ;;  %v197_v18 = vunpack.c.l.bf16 %v17_v3  ;;  %v195_v19 = vunpack.c.l.bf16 %v15_v2  ;;  %v198_v20 = vunpack.c.h.bf16 %v17_v3  ;;  %v196_v22 = vunpack.c.h.bf16 %v15_v2 }
   0x4   :  { %260 = vmatprep.subr.bf16.mxu0 %v279_v1  ;;  %266 = vmatprep.subr.bf16.mxu1 %v282_v4 }
   0x5   :  { %267 = vmatpush3.bf16.msra.mxu1 %v282_v4 }
   0x6   :  { %268 = vmatprep.subr.bf16.mxu1 %v283_v5 }
   0x7   :  { %261 = vmatpush3.bf16.msra.mxu0 %v279_v1 }
   0x9   :  { %269 = vmatpush3.bf16.msra.mxu1 %v283_v5 }
   0xa   :  { %263 = vmatmul.mubr.msk.bf16.vlgmr.msra.gmra.mrb[0].mxu0 %vm45_vm0, %v17_v3  ;;  %270 = vmatprep.subr.bf16.mxu1 %v284_v6 }
   0xd   :  { %271 = vmatpush3.bf16.msra.mxu1 %v284_v6 }
   0xe   :  { %272 = vmatprep.subr.bf16.mxu1 %v285_v7 }
  0x11   :  { %273 = vmatpush3.bf16.msra.mxu1 %v285_v7 }
  0xdd   :  { %v264_v8 = vpop.f32.mrb[0].mxu0 }
  0xde   :  { %v86_v9 = vpop.f32.mrb[1].mxu0  ;;  %v103_v11 = vmax.f32 %v264_v8, 0.0 }
  0xdf   :  { %v265_v10 = vpop.f32.mrb[2].mxu0  ;;  %v101_v14 = vmax.f32 %v86_v9, 0.0 }
  0xe0   :  { %v104_v12 = vmax.f32 %v265_v10, 0.0  ;;  %v89_v13 = vpop.f32.mrb[3].mxu0 }
  0xe1   :  { %v102_v15 = vmax.f32 %v89_v13, 0.0 }
  0xe2   :  { %v114_v16 = vpack.c.bf16 %v104_v12, %v103_v11 }
  0xe3   :  { %v113_v17 = vpack.c.bf16 %v102_v15, %v101_v14 }
  0xe5   :  { %274 = vmatprep.mubr.msk.bf16.mxu1 %vm139_vm1, %v113_v17 }
  0xe6   :  { %275 = vmatmul.mubr.msk.bf16.vlgmr.msra.gmra.mrb[0].mxu1 %vm139_vm1, %v114_v16 }
 0x1b9   :  { %v276_v21 = vpop.f32.mrb[0].mxu1 }
 0x1ba   :  { %v201_v23 = vadd.f32 %v276_v21, %v197_v18  ;;  %v180_v24 = vpop.f32.mrb[1].mxu1 }
 0x1bb   :  { %v199_v25 = vadd.f32 %v195_v19, %v180_v24  ;;  %v277_v26 = vpop.f32.mrb[2].mxu1 }
 0x1bc   :  { %v246_v27 = vpack.c.bf16 %v201_v23, %v201_v23  ;;  %v202_v28 = vadd.f32 %v277_v26, %v198_v20  ;;  %v183_v29 = vpop.f32.mrb[3].mxu1 }
 0x1bd   :  { %v244_v30 = vpack.c.bf16 %v199_v25, %v199_v25  ;;  %v200_v31 = vadd.f32 %v196_v22, %v183_v29 }
 0x1be   :  { %222 = vst.msk [vmem:[%s347_s3 + $0x8] sm:$0xf] %vm219_vm2, %v246_v27  ;;  %v247_v32 = vpack.c.bf16 %v202_v28, %v202_v28 }
 0x1bf   :  { %220 = vst.msk [vmem:[%s347_s3] sm:$0xf] %vm219_vm2, %v244_v30  ;;  %v245_v33 = vpack.c.bf16 %v200_v31, %v200_v31 }
 0x1c0   :  { %223 = vst.msk [vmem:[%s347_s3 + $0xc] sm:$0xf] %vm219_vm2, %v247_v32 }
 0x1c1   :  { %221 = vst.msk [vmem:[%s347_s3 + $0x4] sm:$0xf] %vm219_vm2, %v245_v33 }

// kernel: _lambda_.33
= control target key start
LH: loop header
LB: loop body
LE: loop exit
PB: predicated region body
PF: predicated region fallthrough
CT: control target
= control target key end

     0   :  { %s363_s12 = smov 0   ;;  %s399_s0 = inlined_call_operand.vmem [shape: bf16[2,16,32], index: 0, kind: input, shape index: {}]   ;;  %s400_s1 = inlined_call_operand.vmem [shape: f32[1,32], index: 1, kind: input, shape index: {}]   ;;  %s401_s2 = inlined_call_operand.vmem [shape: f32[1,32], index: 2, kind: input, shape index: {}]   ;;  %s402_s3 = inlined_call_operand.vmem [shape: bf16[2,16,32], index: 3, kind: output, shape index: {}]  }
   0x1 LB: > { %s300_s13 = sadd.s32 4294967295, %s341_s12   ;;  %p304_p0 = scmp.ge.s32.totalorder %s341_s12, 1  ;;  %s341_s12 = sphi %s363_s12, %s13_s12  }
   0x2   : > { %p137_p1 = scmp.lt.s32.totalorder %s341_s12, 3 }
   0x4   : > { %p138_p2 = pnand %p304_p0, %p137_p1 }
   0x5   : > { %p161_p3 = scmp.lt.s32.totalorder (!%p138_p2), %s300_s13, 1  ;;  %vm175_vm0 = vcmask (!%p138_p2), 261120   ;;  %v309_v22 = vld [vmem:[%s400_s1] ss:$0 sm:$0xff] (!%p138_p2)  ;;  %vm242_vm1 = vcmask (!%p138_p2), 257024  }
   0x6   : > { %141 = sbr.rel (%p138_p2) target bundleno = 358 (0x166), region = 32  ;;  %v310_v26 = vld [vmem:[%s401_s2] ss:$0 sm:$0xff] (!%p138_p2) }
   0xd   : > { %s404_s13 = smov (!%p161_p3, %s300_s13), 1 }
   0xe   : > { %s315_s14 = sshll.u32 %s404_s13, 3 }
   0xf   : > { %s165_s17 = scalar_lea.vmem %s399_s0, %s315_s14  ;;  %s170_s24 = scalar_lea.vmem %s402_s3, %s315_s14 }
  0x10   : > { %v320_v0 = vld [vmem:[%s165_s17] sm:$0xff]  }
  0x11   : > { %v321_v1 = vunpack.c.l.bf16 %v320_v0  ;;  %v322_v2 = vunpack.c.h.bf16 %v320_v0 }
  0x13   : > { %v176_v3 = vsel %vm175_vm0, %v321_v1, 0.0  ;;  %v179_v4 = vsel %vm175_vm0, %v322_v2, 0.0 }
  0x14   : > { %177 = vadd.xlane.f32.xlu0 %v176_v3 }
  0x18   : > { %180 = vadd.xlane.f32.xlu0 %v179_v4 }
  0xa1   : > { %v178_v5 = vpop.xlane.xlu0 %177 }
  0xa2   : > { %v183_v6 = vmul.f32 0.03125, %v178_v5 }
  0xa4   : > { %v185_v7 = vsub.f32 %v321_v1, %v183_v6 }
  0xa5   : > { %v181_v8 = vpop.xlane.xlu0 %180 }
  0xa6   : > { %v184_v9 = vmul.f32 0.03125, %v181_v8  ;;  %v187_v10 = vmul.f32 %v185_v7, %v185_v7 }
  0xa8   : > { %v186_v11 = vsub.f32 %v322_v2, %v184_v9  ;;  %v189_v12 = vsel %vm175_vm0, %v187_v10, 0.0 }
  0xa9   : > { %190 = vadd.xlane.f32.xlu1 %v189_v12 }
  0xaa   : > { %v188_v13 = vmul.f32 %v186_v11, %v186_v11 }
  0xac   : > { %v192_v14 = vsel %vm175_vm0, %v188_v13, 0.0 }
  0xad   : > { %193 = vadd.xlane.f32.xlu1 %v192_v14 }
 0x136   : > { %v191_v15 = vpop.xlane.xlu1 %190 }
 0x137   : > { %v195_v16 = vmul.f32 0.03125, %v191_v15 }
 0x139   : > { %v197_v17 = vadd.f32 1e-05, %v195_v16 }
 0x13a   : > { %v194_v18 = vpop.xlane.xlu1 %193 }
 0x13b   : > { %331 = vrsqrt.f32 %v197_v17  ;;  %v196_v19 = vmul.f32 0.03125, %v194_v18 }
 0x13d   : > { %v198_v20 = vadd.f32 1e-05, %v196_v19 }
 0x13f   : > { %333 = vrsqrt.f32 %v198_v20 }
 0x145   : > { %v332_v21 = vpop.eup %331 }
 0x146   : > { %v201_v23 = vmul.f32 %v332_v21, %v185_v7 }
 0x148   : > { %v210_v24 = vmul.f32 %v309_v22, %v201_v23 }
 0x149   : > { %v334_v25 = vpop.eup %333 }
 0x14a   : > { %v202_v27 = vmul.f32 %v334_v25, %v186_v11  ;;  %v219_v28 = vadd.f32 %v310_v26, %v210_v24 }
 0x14c   : > { %v211_v29 = vmul.f32 %v309_v22, %v202_v27  ;;  %v221_v31 = vsel %vm175_vm0, %v219_v28, 0.0 }
 0x14e   : > { %v220_v30 = vadd.f32 %v310_v26, %v211_v29 }
 0x150   : > { %v222_v32 = vsel %vm175_vm0, %v220_v30, 0.0 }
 0x151   : > { %v223_v33 = vadd.f32 %v222_v32, %v221_v31 }
 0x153   : > { %v224_v34 = vrot.slane %v223_v33, 4 }
 0x155   : > { %v225_v35 = vadd.f32 %v224_v34, %v223_v33 }
 0x157   : > { %v226_v36 = vrot.slane %v225_v35, 2 }
 0x159   : > { %v227_v37 = vadd.f32 %v226_v36, %v225_v35 }
 0x15b   : > { %v228_v38 = vrot.slane %v227_v37, 1 }
 0x15d   : > { %v229_v39 = vadd.f32 %v228_v38, %v227_v37 }
 0x15f   : > { %v231_v40 = vmul.f32 0.0625, %v229_v39 }
 0x161   : > { %v232_v41 = vsub.f32 %v219_v28, %v231_v40  ;;  %v233_v42 = vsub.f32 %v220_v30, %v231_v40 }
 0x163   : > { %v317_v43 = vpack.c.bf16 %v232_v41, %v232_v41  ;;  %v318_v44 = vpack.c.bf16 %v233_v42, %v233_v42 }
 0x165   : > { %243 = vst.msk [vmem:[%s170_s24] sm:$0xf] %vm242_vm1, %v317_v43  ;;  %244 = vst.msk [vmem:[%s170_s24 + $0x4] sm:$0xf] %vm242_vm1, %v318_v44 }
 0x166 PF: > { %s13_s12 = sadd.s32 1, %s341_s12  }
 0x167   : > { %p10_p4 = scmp.ge.s32.totalorder %s13_s12, 4  }
 0x169   :  { %12 = sbr.rel (!%p10_p4) target bundleno = 1 (0x1), region = 62 }

// kernel: _lambda_.32
= control target key start
LH: loop header
LB: loop body
LE: loop exit
PB: predicated region body
PF: predicated region fallthrough
CT: control target
= control target key end

     0   :  { %s341_s9 = smov 0   ;;  %s361_s0 = inlined_call_operand.vmem [shape: bf16[2,16,32], index: 0, kind: input, shape index: {}]   ;;  %s362_s1 = inlined_call_operand.vmem [shape: bf16[16,16], index: 1, kind: input, shape index: {}]   ;;  %s363_s2 = inlined_call_operand.vmem [shape: bf16[2,16,32], index: 2, kind: output, shape index: {}]  }
   0x1 LB: > { %s275_s10 = sadd.s32 4294967295, %s322_s9   ;;  %p279_p0 = scmp.ge.s32.totalorder %s322_s9, 1  ;;  %s322_s9 = sphi %s341_s9, %s12_s9  }
   0x2   : > { %p112_p1 = scmp.lt.s32.totalorder %s322_s9, 3 }
   0x4   : > { %p113_p2 = pnand %p279_p0, %p112_p1 }
   0x5   : > { %p134_p3 = scmp.lt.s32.totalorder (!%p113_p2), %s275_s10, 1  ;;  %v324_v0 = vmov (!%p113_p2), 0.0   ;;  %vm325_vm0 = vmmov (!%p113_p2), 0   ;;  %v314_v2 = vld [vmem:[%s362_s1] sm:$0xff] (!%p113_p2)   ;;  %vm162_vm1 = vcmask (!%p113_p2), 130048   ;;  %vm217_vm2 = vcmask (!%p113_p2), 257024  }
   0x6   : > { %116 = sbr.rel (%p113_p2) target bundleno = 239 (0xef), region = 28  ;;  %297 = vmatprep.subr.bf16.mxu0 (!%p113_p2), %v324_v0  ;;  %299 = vmatprep.mubr.msk.bf16.mxu0 (!%p113_p2), %vm325_vm0, %v324_v0 }
   0xd   : > { %s365_s10 = smov (!%p134_p3, %s275_s10), 1 }
   0xe   : > { %s291_s11 = sshll.u32 %s365_s10, 3 }
   0xf   : > { %s138_s14 = scalar_lea.vmem %s361_s0, %s291_s11  ;;  %s143_s19 = scalar_lea.vmem %s363_s2, %s291_s11 }
  0x10   : > { %v145_v1 = vld [vmem:[%s138_s14] sm:$0xff]  }
  0x11   : > { %298 = vmatpush3.bf16.msra.mxu0 %v145_v1  ;;  %v147_v3 = vunpack.c.l.bf16 %v145_v1  ;;  %v148_v4 = vunpack.c.h.bf16 %v145_v1 }
  0x14   : > { %300 = vmatmul.mubr.msk.bf16.vlgmr.msra.gmra.mrb[0].mxu0 %vm162_vm1, %v314_v2 }
  0xe7   : > { %v200_v5 = vpop.f32.mrb[0].mxu0 }
  0xe8   : > { %v207_v6 = vsub.f32 %v147_v3, %v200_v5  ;;  %v301_v7 = vpop.f32.mrb[1].mxu0 }
  0xe9   : > { %v203_v8 = vpop.f32.mrb[2].mxu0 }
  0xea   : > { %v293_v9 = vpack.c.bf16 %v207_v6, %v207_v6  ;;  %v208_v10 = vsub.f32 %v148_v4, %v203_v8  ;;  %v302_v11 = vpop.f32.mrb[3].mxu0 }
  0xec   : > { %218 = vst.msk [vmem:[%s143_s19] sm:$0xf] %vm217_vm2, %v293_v9  ;;  %v294_v12 = vpack.c.bf16 %v208_v10, %v208_v10 }
  0xee   : > { %219 = vst.msk [vmem:[%s143_s19 + $0x4] sm:$0xf] %vm217_vm2, %v294_v12 }
  0xef PF: > { %s12_s9 = sadd.s32 1, %s322_s9  }
  0xf0   : > { %p9_p4 = scmp.ge.s32.totalorder %s12_s9, 4  }
  0xf2   :  { %11 = sbr.rel (!%p9_p4) target bundleno = 1 (0x1), region = 58 }

// kernel: _lambda_.34
= control target key start
LH: loop header
LB: loop body
LE: loop exit
PB: predicated region body
PF: predicated region fallthrough
CT: control target
= control target key end

     0   :  { %vm52_vm0 = vcmask 261120   ;;  %vm124_vm1 = vcmask 519168   ;;  %s211_s1 = inlined_call_operand.vmem [shape: bf16[32,64], index: 1, kind: input, shape index: {}]   ;;  %s212_s0 = inlined_call_operand.vmem [shape: bf16[32,32], index: 0, kind: input, shape index: {}]   ;;  %s213_s2 = inlined_call_operand.vmem [shape: f32[1,64], index: 2, kind: input, shape index: {}]   ;;  %s214_s3 = inlined_call_operand.vmem [shape: bf16[32,64], index: 3, kind: output, shape index: {}]  }
   0x1   :  { %v160_v0 = vld [vmem:[%s211_s1] sm:$0xff]   ;;  %v161_v1 = vld [vmem:[%s211_s1 + $0x8] sm:$0xff]  }
   0x2   :  { %152 = vmatprep.subr.bf16.mxu0 %v160_v0  ;;  %v162_v2 = vld [vmem:[%s212_s0] sm:$0xff]   ;;  %v163_v3 = vld [vmem:[%s212_s0 + $0x8] sm:$0xff]  }
   0x3   :  { %153 = vmatpush3.bf16.msra.mxu0 %v160_v0  ;;  %156 = vmatprep.mubr.msk.bf16.mxu0 %vm52_vm0, %v162_v2  ;;  %v133_v4 = vld [vmem:[%s213_s2] ss:$0 sm:$0xff] }
   0x4   :  { %154 = vmatprep.subr.bf16.mxu0 %v161_v1 }
   0x7   :  { %155 = vmatpush3.bf16.msra.mxu0 %v161_v1 }
   0xa   :  { %157 = vmatmul.mubr.msk.bf16.vlgmr.msra.gmra.mrb[0].mxu0 %vm52_vm0, %v163_v3 }
  0xdd   :  { %v158_v5 = vpop.f32.mrb[0].mxu0 }
  0xde   :  { %v102_v6 = vadd.f32 %v158_v5, %v133_v4  ;;  %v93_v7 = vpop.f32.mrb[1].mxu0 }
  0xdf   :  { %v94_v8 = vadd.f32 %v133_v4, %v93_v7  ;;  %v159_v9 = vpop.f32.mrb[2].mxu0 }
  0xe0   :  { %v146_v10 = vpack.c.bf16 %v102_v6, %v102_v6  ;;  %v105_v11 = vadd.f32 %v159_v9, %v133_v4  ;;  %v96_v12 = vpop.f32.mrb[3].mxu0 }
  0xe1   :  { %v144_v13 = vpack.c.bf16 %v94_v8, %v94_v8  ;;  %v97_v14 = vadd.f32 %v133_v4, %v96_v12 }
  0xe2   :  { %127 = vst.msk [vmem:[%s214_s3 + $0x8] sm:$0xf] %vm124_vm1, %v146_v10  ;;  %v147_v15 = vpack.c.bf16 %v105_v11, %v105_v11 }
  0xe3   :  { %125 = vst.msk [vmem:[%s214_s3] sm:$0xf] %vm124_vm1, %v144_v13  ;;  %v145_v16 = vpack.c.bf16 %v97_v14, %v97_v14 }
  0xe4   :  { %128 = vst.msk [vmem:[%s214_s3 + $0xc] sm:$0xf] %vm124_vm1, %v147_v15 }
  0xe5   :  { %126 = vst.msk [vmem:[%s214_s3 + $0x4] sm:$0xf] %vm124_vm1, %v145_v16 }

// kernel: _lambda_.38
= control target key start
LH: loop header
LB: loop body
LE: loop exit
PB: predicated region body
PF: predicated region fallthrough
CT: control target
= control target key end

     0   :  { %s436_s12 = smov 0   ;;  %s459_s0 = inlined_call_operand.vmem [shape: bf16[2,16,32], index: 0, kind: input, shape index: {}]   ;;  %s460_s1 = inlined_call_operand.vmem [shape: bf16[16,16], index: 1, kind: input, shape index: {}]   ;;  %s461_s2 = inlined_call_operand.vmem [shape: bf16[2,16,32], index: 2, kind: output, shape index: {0}]   ;;  %s462_s3 = inlined_call_operand.vmem [shape: bf16[2,16,32], index: 3, kind: output, shape index: {1}]  }
   0x1 LB: > { %s358_s13 = sadd.s32 4294967295, %s412_s12   ;;  %p362_p0 = scmp.ge.s32.totalorder %s412_s12, 1  ;;  %s412_s12 = sphi %s436_s12, %s14_s12  }
   0x2   : > { %p140_p1 = scmp.lt.s32.totalorder %s412_s12, 3 }
   0x4   : > { %p141_p2 = pnand %p362_p0, %p140_p1 }
   0x5   : > { %p169_p3 = scmp.lt.s32.totalorder (!%p141_p2), %s358_s13, 1  ;;  %v414_v0 = vmov (!%p141_p2), 0.0   ;;  %vm415_vm0 = vmmov (!%p141_p2), 0   ;;  %v404_v2 = vld [vmem:[%s460_s1] sm:$0xff] (!%p141_p2)   ;;  %vm202_vm1 = vcmask (!%p141_p2), 130048   ;;  %vm257_vm2 = vcmask (!%p141_p2), 257024  }
   0x6   : > { %144 = sbr.rel (%p141_p2) target bundleno = 239 (0xef), region = 28  ;;  %387 = vmatprep.subr.bf16.mxu0 (!%p141_p2), %v414_v0  ;;  %389 = vmatprep.mubr.msk.bf16.mxu0 (!%p141_p2), %vm415_vm0, %v414_v0 }
   0xd   : > { %s464_s13 = smov (!%p169_p3, %s358_s13), 1 }
   0xe   : > { %s378_s14 = sshll.u32 %s464_s13, 3 }
   0xf   : > { %s173_s17 = scalar_lea.vmem %s459_s0, %s378_s14  ;;  %s183_s22 = scalar_lea.vmem %s462_s3, %s378_s14 }
  0x10   : > { %v185_v1 = vld [vmem:[%s173_s17] sm:$0xff]   ;;  %s178_s25 = scalar_lea.vmem %s461_s2, %s378_s14 }
  0x11   : > { %388 = vmatpush3.bf16.msra.mxu0 %v185_v1  ;;  %v187_v3 = vunpack.c.l.bf16 %v185_v1  ;;  %v188_v4 = vunpack.c.h.bf16 %v185_v1 }
  0x14   : > { %390 = vmatmul.mubr.msk.bf16.vlgmr.msra.gmra.mrb[0].mxu0 %vm202_vm1, %v404_v2 }
  0xe7   : > { %v240_v5 = vpop.f32.mrb[0].mxu0 }
  0xe8   : > { %v247_v6 = vsub.f32 %v187_v3, %v240_v5  ;;  %v383_v7 = vpack.c.bf16 %v240_v5, %v240_v5  ;;  %v391_v8 = vpop.f32.mrb[1].mxu0 }
  0xe9   : > { %v243_v9 = vpop.f32.mrb[2].mxu0 }
  0xea   : > { %v381_v10 = vpack.c.bf16 %v247_v6, %v247_v6  ;;  %268 = vst.msk [vmem:[%s183_s22] sm:$0xf] %vm257_vm2, %v383_v7  ;;  %v248_v11 = vsub.f32 %v188_v4, %v243_v9  ;;  %v384_v12 = vpack.c.bf16 %v243_v9, %v243_v9  ;;  %v392_v13 = vpop.f32.mrb[3].mxu0 }
  0xec   : > { %258 = vst.msk [vmem:[%s178_s25] sm:$0xf] %vm257_vm2, %v381_v10  ;;  %v382_v14 = vpack.c.bf16 %v248_v11, %v248_v11  ;;  %269 = vst.msk [vmem:[%s183_s22 + $0x4] sm:$0xf] %vm257_vm2, %v384_v12 }
  0xee   : > { %259 = vst.msk [vmem:[%s178_s25 + $0x4] sm:$0xf] %vm257_vm2, %v382_v14 }
  0xef PF: > { %s14_s12 = sadd.s32 1, %s412_s12  }
  0xf0   : > { %p11_p4 = scmp.ge.s32.totalorder %s14_s12, 4  }
  0xf2   :  { %13 = sbr.rel (!%p11_p4) target bundleno = 1 (0x1), region = 70 }

// kernel: _lambda_.40
= control target key start
LH: loop header
LB: loop body
LE: loop exit
PB: predicated region body
PF: predicated region fallthrough
CT: control target
= control target key end

     0   :  { %vm74_vm0 = vcmask 785408   ;;  %vm130_vm1 = vcmask 31744   ;;  %s234_s1 = inlined_call_operand.vmem [shape: bf16[96,4], index: 1, kind: input, shape index: {}]   ;;  %s235_s0 = inlined_call_operand.vmem [shape: bf16[32,96], index: 0, kind: input, shape index: {}]   ;;  %s236_s2 = inlined_call_operand.vmem [shape: f32[32,4], index: 2, kind: output, shape index: {}]  }
   0x1   :  { %v173_v0 = vld [vmem:[%s234_s1] sm:$0xff]   ;;  %v174_v1 = vld [vmem:[%s234_s1 + $0x8] sm:$0xff]   ;;  %v175_v2 = vld [vmem:[%s234_s1 + $0x10] sm:$0xff]  }
   0x2   :  { %157 = vmatprep.subr.bf16.mxu0 %v173_v0  ;;  %v179_v3 = vld [vmem:[%s235_s0] sm:$0xff]   ;;  %v176_v4 = vld [vmem:[%s234_s1 + $0x18] sm:$0xff]   ;;  %v178_v6 = vld [vmem:[%s234_s1 + $0x28] sm:$0xff]  }
   0x3   :  { %158 = vmatpush3.bf16.msra.mxu0 %v173_v0  ;;  %169 = vmatprep.mubr.msk.bf16.mxu0 %vm74_vm0, %v179_v3  ;;  %v177_v5 = vld [vmem:[%s234_s1 + $0x20] sm:$0xff]   ;;  %v180_v7 = vld [vmem:[%s235_s0 + $0x8] sm:$0xff]  }
   0x4   :  { %159 = vmatprep.subr.bf16.mxu0 %v174_v1 }
   0x7   :  { %160 = vmatpush3.bf16.msra.mxu0 %v174_v1 }
   0x8   :  { %161 = vmatprep.subr.bf16.mxu0 %v175_v2 }
   0xb   :  { %162 = vmatpush3.bf16.msra.mxu0 %v175_v2 }
   0xc   :  { %163 = vmatprep.subr.bf16.mxu0 %v176_v4 }
   0xf   :  { %164 = vmatpush3.bf16.msra.mxu0 %v176_v4 }
  0x10   :  { %165 = vmatprep.subr.bf16.mxu0 %v177_v5 }
  0x13   :  { %166 = vmatpush3.bf16.msra.mxu0 %v177_v5 }
  0x14   :  { %167 = vmatprep.subr.bf16.mxu0 %v178_v6 }
  0x17   :  { %168 = vmatpush3.bf16.msra.mxu0 %v178_v6 }
  0x1a   :  { %170 = vmatmul.mubr.msk.bf16.vlgmr.msra.gmra.mrb[0].mxu0 %vm74_vm0, %v180_v7 }
  0xed   :  { %v171_v8 = vpop.f32.mrb[0].mxu0 }
  0xee   :  { %133 = vst.msk [vmem:[%s236_s2 + $0x10] sm:$0xff] %vm130_vm1, %v171_v8  ;;  %v115_v9 = vpop.f32.mrb[1].mxu0 }
  0xef   :  { %131 = vst.msk [vmem:[%s236_s2] sm:$0xff] %vm130_vm1, %v115_v9  ;;  %v172_v10 = vpop.f32.mrb[2].mxu0 }
  0xf0   :  { %134 = vst.msk [vmem:[%s236_s2 + $0x18] sm:$0xff] %vm130_vm1, %v172_v10  ;;  %v118_v11 = vpop.f32.mrb[3].mxu0 }
  0xf1   :  { %132 = vst.msk [vmem:[%s236_s2 + $0x8] sm:$0xff] %vm130_vm1, %v118_v11 }

// kernel: _lambda_.41
= control target key start
LH: loop header
LB: loop body
LE: loop exit
PB: predicated region body
PF: predicated region fallthrough
CT: control target
= control target key end

     0   :  { %vm55_vm0 = vcmask 261120   ;;  %vm119_vm1 = vcmask 31744   ;;  %s215_s1 = inlined_call_operand.vmem [shape: bf16[32,4], index: 1, kind: input, shape index: {}]   ;;  %s216_s0 = inlined_call_operand.vmem [shape: bf16[32,32], index: 0, kind: input, shape index: {}]   ;;  %s217_s2 = inlined_call_operand.vmem [shape: f32[1,4], index: 2, kind: input, shape index: {}]   ;;  %s218_s3 = inlined_call_operand.vmem [shape: f32[32,4], index: 3, kind: input, shape index: {}]   ;;  %s219_s4 = inlined_call_operand.vmem [shape: f32[32,4], index: 4, kind: output, shape index: {}]  }
   0x1   :  { %v147_v0 = vld [vmem:[%s215_s1] sm:$0xff]   ;;  %v148_v1 = vld [vmem:[%s215_s1 + $0x8] sm:$0xff]   ;;  %v113_v6 = vld [vmem:[%s218_s3 + $0x10] sm:$0xff] }
   0x2   :  { %139 = vmatprep.subr.bf16.mxu0 %v147_v0  ;;  %v149_v2 = vld [vmem:[%s216_s0] sm:$0xff]   ;;  %v150_v3 = vld [vmem:[%s216_s0 + $0x8] sm:$0xff]   ;;  %v114_v12 = vld [vmem:[%s218_s3 + $0x18] sm:$0xff] }
   0x3   :  { %140 = vmatpush3.bf16.msra.mxu0 %v147_v0  ;;  %143 = vmatprep.mubr.msk.bf16.mxu0 %vm55_vm0, %v149_v2  ;;  %v128_v4 = vld [vmem:[%s217_s2] ss:$0 sm:$0xff]  ;;  %v112_v16 = vld [vmem:[%s218_s3 + $0x8] sm:$0xff] }
   0x4   :  { %141 = vmatprep.subr.bf16.mxu0 %v148_v1  ;;  %v111_v9 = vld [vmem:[%s218_s3] sm:$0xff] }
   0x7   :  { %142 = vmatpush3.bf16.msra.mxu0 %v148_v1 }
   0xa   :  { %144 = vmatmul.mubr.msk.bf16.vlgmr.msra.gmra.mrb[0].mxu0 %vm55_vm0, %v150_v3 }
  0xdd   :  { %v145_v5 = vpop.f32.mrb[0].mxu0 }
  0xde   :  { %v105_v7 = vadd.f32 %v145_v5, %v128_v4  ;;  %v96_v8 = vpop.f32.mrb[1].mxu0 }
  0xdf   :  { %v97_v10 = vadd.f32 %v128_v4, %v96_v8  ;;  %v146_v11 = vpop.f32.mrb[2].mxu0 }
  0xe0   :  { %v117_v13 = vadd.f32 %v113_v6, %v105_v7  ;;  %v108_v14 = vadd.f32 %v146_v11, %v128_v4  ;;  %v99_v15 = vpop.f32.mrb[3].mxu0 }
  0xe1   :  { %v115_v17 = vadd.f32 %v111_v9, %v97_v10  ;;  %v100_v18 = vadd.f32 %v128_v4, %v99_v15 }
  0xe2   :  { %122 = vst.msk [vmem:[%s219_s4 + $0x10] sm:$0xff] %vm119_vm1, %v117_v13  ;;  %v118_v19 = vadd.f32 %v114_v12, %v108_v14 }
  0xe3   :  { %120 = vst.msk [vmem:[%s219_s4] sm:$0xff] %vm119_vm1, %v115_v17  ;;  %v116_v20 = vadd.f32 %v112_v16, %v100_v18 }
  0xe4   :  { %123 = vst.msk [vmem:[%s219_s4 + $0x18] sm:$0xff] %vm119_vm1, %v118_v19 }
  0xe5   :  { %121 = vst.msk [vmem:[%s219_s4 + $0x8] sm:$0xff] %vm119_vm1, %v116_v20 }

</bundles_post_ra>
